<compile_context>
chip_gen: v6e
topology: v6e:2x2x1
jax: 0.10.0
libtpu: 0.0.40
codegen_flags: <defaults>
</compile_context>

<pallas_src>
import functools

import jax
import jax.numpy as jnp
from jax.experimental import pallas as pl
from jax.experimental.pallas import tpu as pltpu

INPUT_SIZE = 128
HIDDEN_LAYERS = [64, 32]


def weighted_average_kernel(
    x_ref, batch_ref,
    w1v1_ref, b1c1_ref,               # fused layer-1 (MLP || MLPw): (128,128), (1,128)
    w2_ref, b2_ref, w3_ref, b3_ref,   # MLP layers 2..3
    v2_ref, c2_ref,                   # MLPw output layer
    out_ref,
    seg_ref, cnt_ref,                 # VMEM accumulators: (B_pad,128), (B_pad,1)
    *, n_rows, ragged):
    i = pl.program_id(0)
    tn = x_ref.shape[0]

    @pl.when(i == 0)
    def _():
        seg_ref[...] = jnp.zeros_like(seg_ref)
        cnt_ref[...] = jnp.zeros_like(cnt_ref)

    x = x_ref[...]                                                      # (TN, 128) f32

    # ---- fused layer 1 of both MLPs: one 128-wide MXU matmul, shared SiLU ----
    y = jnp.dot(x, w1v1_ref[...], preferred_element_type=jnp.float32) + b1c1_ref[...]
    y = y * jax.nn.sigmoid(y)                                           # SiLU
    h = y[:, :HIDDEN_LAYERS[0]]                                         # (TN, 64) MLP branch
    g = y[:, HIDDEN_LAYERS[0]:]                                         # (TN, 64) MLPw branch

    # ---- MLP tail: 64 -> 32 -> 128 ----
    h = jnp.dot(h, w2_ref[...], preferred_element_type=jnp.float32) + b2_ref[...]
    h = h * jax.nn.sigmoid(h)                                           # SiLU
    fx = jnp.dot(h, w3_ref[...], preferred_element_type=jnp.float32) + b3_ref[...]

    # ---- MLPw tail: 64 -> 1, sigmoid output ----
    wl = jnp.dot(g, v2_ref[...], preferred_element_type=jnp.float32) + c2_ref[...]  # (TN, 1)
    w = jax.nn.sigmoid(wl)

    weighted = w * fx                                                   # (TN, 128)

    # ---- per-tile segment partial sums via one-hot matmul on the MXU ----
    num_seg = seg_ref.shape[0]
    batch_row = batch_ref[...]                                          # (1, TN) int32
    seg_ids = jax.lax.broadcasted_iota(jnp.int32, (num_seg, tn), 0)
    hit = seg_ids == batch_row                                          # (B_pad, TN) bool

    if ragged:
        # Last tile may extend past N: OOB block data is undefined, so mask both
        # the one-hot columns (counts / sums) and the weighted rows (NaN safety).
        base = i * tn
        col = base + jax.lax.broadcasted_iota(jnp.int32, (1, tn), 1)    # (1, TN)
        hit = jnp.logical_and(hit, col < n_rows)
        row = base + jax.lax.broadcasted_iota(jnp.int32, (tn, 1), 0)    # (TN, 1)
        weighted = jnp.where(row < n_rows, weighted, 0.0)

    onehot = hit.astype(jnp.float32)                                    # (B_pad, TN)
    seg_ref[...] += jnp.dot(onehot, weighted, preferred_element_type=jnp.float32)
    cnt_ref[...] += jnp.sum(onehot, axis=1, keepdims=True)

    @pl.when(i == pl.num_programs(0) - 1)
    def _():
        # include_self=True: the initial zero of `res` is part of the mean -> count+1
        out_ref[...] = (seg_ref[...] / (cnt_ref[...] + 1.0)).astype(out_ref.dtype)


def _round_up(x, m):
    return (x + m - 1) // m * m


@functools.partial(jax.jit, static_argnames=("num_segments", "tn"))
def weighted_average(x, batch, params, num_segments, tn=2048):
    n, d = x.shape
    assert d == INPUT_SIZE
    assert tn % 128 == 0, "row-tile size must be a multiple of 128"

    (w1, b1), (w2, b2), (w3, b3), (v1, c1), (v2, c2) = params
    # Fuse the two layer-1 weights (same LHS, same activation) into one 128x128 matmul.
    w1v1 = jnp.concatenate([w1, v1], axis=1)      # (128, 128)
    b1c1 = jnp.concatenate([b1, c1], axis=1)      # (1, 128)

    # No HBM padding of x/batch: either one full-array block (n <= tn) or
    # (tn,128) blocks with the ragged tail masked inside the kernel.
    if n <= tn:
        tn_eff = n
    else:
        tn_eff = tn
    num_tiles = pl.cdiv(n, tn_eff)
    ragged = (n % tn_eff) != 0

    b_pad = _round_up(num_segments, 8)            # sublane-aligned segment axis
    batch2d = batch.astype(jnp.int32).reshape(1, n)

    kern = functools.partial(weighted_average_kernel, n_rows=n, ragged=ragged)

    def resident(shape):
        # Full-shape block with constant block index -> stays pinned in VMEM.
        return pl.BlockSpec(shape, lambda i: (0, 0))

    grid_spec = pltpu.PrefetchScalarGridSpec(
        num_scalar_prefetch=0,
        grid=(num_tiles,),
        in_specs=[
            pl.BlockSpec((tn_eff, d), lambda i: (i, 0)),   # x row tile (pipelined)
            pl.BlockSpec((1, tn_eff), lambda i: (0, i)),   # batch row tile
            resident(w1v1.shape), resident(b1c1.shape),
            resident(w2.shape), resident(b2.shape),
            resident(w3.shape), resident(b3.shape),
            resident(v2.shape), resident(c2.shape),
        ],
        out_specs=pl.BlockSpec((b_pad, d), lambda i: (0, 0)),
        scratch_shapes=[
            pltpu.VMEM((b_pad, d), jnp.float32),           # seg_sum accumulator
            pltpu.VMEM((b_pad, 1), jnp.float32),           # counts accumulator
        ],
    )

    out = pl.pallas_call(
        kern,
        out_shape=jax.ShapeDtypeStruct((b_pad, d), x.dtype),
        grid_spec=grid_spec,
        compiler_params=pltpu.CompilerParams(
            dimension_semantics=("arbitrary",)),           # row axis is a reduction
    )(x, batch2d, w1v1, b1c1, w2, b2, w3, b3, v2, c2)
    return out[:num_segments]


def init_linear(key, fan_in, fan_out):
    """PyTorch nn.Linear default init (uniform +-1/sqrt(fan_in)), weight stored as (in, out)."""
    kw, kb = jax.random.split(key)
    bound = 1.0 / float(fan_in) ** 0.5
    w = jax.random.uniform(kw, (fan_in, fan_out), jnp.float32, -bound, bound)
    b = jax.random.uniform(kb, (1, fan_out), jnp.float32, -bound, bound)
    return w, b


def init_params(key):
    keys = jax.random.split(key, 5)
    return [
        # MLP: 128 -> 64 -> 32 -> 128
        init_linear(keys[0], INPUT_SIZE, HIDDEN_LAYERS[0]),
        init_linear(keys[1], HIDDEN_LAYERS[0], HIDDEN_LAYERS[1]),
        init_linear(keys[2], HIDDEN_LAYERS[1], INPUT_SIZE),
        # MLPw: 128 -> 64 -> 1   (hidden_layers[:-1] == [64])
        init_linear(keys[3], INPUT_SIZE, HIDDEN_LAYERS[0]),
        init_linear(keys[4], HIDDEN_LAYERS[0], 1),
    ]


def reference(x, batch, params, num_segments):
    """Pure-JAX reference of the PyTorch forward (for correctness check)."""
    (w1, b1), (w2, b2), (w3, b3), (v1, c1), (v2, c2) = params
    h = jax.nn.silu(x @ w1 + b1)
    h = jax.nn.silu(h @ w2 + b2)
    fx = h @ w3 + b3
    g = jax.nn.silu(x @ v1 + c1)
    w = jax.nn.sigmoid(g @ v2 + c2)
    weighted = w * fx
    seg_sum = jax.ops.segment_sum(weighted, batch, num_segments)
    counts = jax.ops.segment_sum(jnp.ones((x.shape[0],), jnp.float32), batch, num_segments)
    return seg_sum / (counts[:, None] + 1.0)


if __name__ == "__main__":
    key = jax.random.PRNGKey(0)
    k_params, k_x, k_b, k_x2 = jax.random.split(key, 4)
    params = init_params(k_params)

    # --- test 1: multi-tile path with a ragged last tile (N=300, TN=128 -> 3 tiles) ---
    N1, num_segments1 = 300, 5
    x1 = jax.random.normal(k_x, (N1, INPUT_SIZE), jnp.float32)
    batch1 = jax.random.randint(k_b, (N1,), 0, num_segments1, jnp.int32)
    out1 = jax.block_until_ready(weighted_average(x1, batch1, params, num_segments1, tn=128))
    ref1 = reference(x1, batch1, params, num_segments1)
    assert out1.shape == (num_segments1, INPUT_SIZE)
    assert jnp.allclose(out1, ref1, atol=1e-4, rtol=1e-4), "mismatch vs. reference (tiled)"

    # --- test 1b: same data, default tile -> single full-array block, N not multiple of 8 ---
    out1b = jax.block_until_ready(weighted_average(x1, batch1, params, num_segments1))
    assert jnp.allclose(out1b, ref1, atol=1e-4, rtol=1e-4), "mismatch vs. reference (single block)"

    # --- test 2: small single-tile path (like the original N=16 case) ---
    N2 = 16
    x2 = jax.random.normal(k_x2, (N2, INPUT_SIZE), jnp.float32)
    batch2 = jnp.array([0, 0, 0, 1, 1, 1, 1, 2, 2, 3, 3, 3, 0, 1, 2, 3], jnp.int32)
    num_segments2 = int(batch2.max()) + 1
    out2 = jax.block_until_ready(weighted_average(x2, batch2, params, num_segments2))
    ref2 = reference(x2, batch2, params, num_segments2)
    assert out2.shape == (num_segments2, INPUT_SIZE)
    assert jnp.allclose(out2, ref2, atol=1e-5, rtol=1e-5), "mismatch vs. reference (small)"

    print("KERNEL_OK")
</pallas_src>

<mosaic_0001>
module attributes {stable_mosaic.version = 11 : i64} {
  func.func @weighted_average_kernel(%arg0: i32, %arg1: memref<128x128xf32, #tpu.memory_space<vmem>>, %arg2: memref<1x128xi32, #tpu.memory_space<vmem>>, %arg3: memref<128x128xf32, #tpu.memory_space<vmem>>, %arg4: memref<1x128xf32, #tpu.memory_space<vmem>>, %arg5: memref<64x32xf32, #tpu.memory_space<vmem>>, %arg6: memref<1x32xf32, #tpu.memory_space<vmem>>, %arg7: memref<32x128xf32, #tpu.memory_space<vmem>>, %arg8: memref<1x128xf32, #tpu.memory_space<vmem>>, %arg9: memref<64x1xf32, #tpu.memory_space<vmem>>, %arg10: memref<1x1xf32, #tpu.memory_space<vmem>>, %arg11: memref<8x128xf32, #tpu.memory_space<vmem>>, %arg12: memref<8x128xf32, #tpu.memory_space<vmem>>, %arg13: memref<8x1xf32, #tpu.memory_space<vmem>>) attributes {dimension_semantics = [#tpu.dimension_semantics<arbitrary>], iteration_bounds = array<i64: 3>, scalar_prefetch = 0 : i64, scratch_operands = 2 : i64, tpu.core_type = #tpu.core_type<tc>, window_params = [{transform_indices = @transform_0, window_bounds = array<i64: 128, 128>}, {transform_indices = @transform_1, window_bounds = array<i64: 1, 128>}, {pipeline_mode = #tpu.pipeline_mode<synchronous>, transform_indices = @transform_2, window_bounds = array<i64: 128, 128>}, {pipeline_mode = #tpu.pipeline_mode<synchronous>, transform_indices = @transform_3, window_bounds = array<i64: 1, 128>}, {pipeline_mode = #tpu.pipeline_mode<synchronous>, transform_indices = @transform_4, window_bounds = array<i64: 64, 32>}, {pipeline_mode = #tpu.pipeline_mode<synchronous>, transform_indices = @transform_5, window_bounds = array<i64: 1, 32>}, {pipeline_mode = #tpu.pipeline_mode<synchronous>, transform_indices = @transform_6, window_bounds = array<i64: 32, 128>}, {pipeline_mode = #tpu.pipeline_mode<synchronous>, transform_indices = @transform_7, window_bounds = array<i64: 1, 128>}, {pipeline_mode = #tpu.pipeline_mode<synchronous>, transform_indices = @transform_8, window_bounds = array<i64: 64, 1>}, {pipeline_mode = #tpu.pipeline_mode<synchronous>, transform_indices = @transform_9, window_bounds = array<i64: 1, 1>}, {pipeline_mode = #tpu.pipeline_mode<synchronous>, transform_indices = @transform_10, window_bounds = array<i64: 8, 128>}]} {
    %c0_i32 = arith.constant 0 : i32
    %0 = arith.cmpi eq, %arg0, %c0_i32 : i32
    %1 = arith.extui %0 : i1 to i32
    %c0_i32_0 = arith.constant 0 : i32
    %2 = arith.cmpi ne, %1, %c0_i32_0 : i32
    scf.if %2 {
      %cst_39 = arith.constant 0.000000e+00 : f32
      %80 = vector.broadcast %cst_39 : f32 to vector<8x128xf32>
      %c0_40 = arith.constant 0 : index
      %c0_41 = arith.constant 0 : index
      %81 = vector.load %arg12[%c0_40, %c0_41] : memref<8x128xf32, #tpu.memory_space<vmem>>, vector<8x128xf32>
      tpu.vector_store %arg12[%c0_40, %c0_41], %80 {strides = array<i32>} : memref<8x128xf32, #tpu.memory_space<vmem>>, vector<8x128xf32>,
      %cst_42 = arith.constant 0.000000e+00 : f32
      %82 = vector.broadcast %cst_42 : f32 to vector<8x1xf32>
      %c0_43 = arith.constant 0 : index
      %c0_44 = arith.constant 0 : index
      %83 = vector.load %arg13[%c0_43, %c0_44] : memref<8x1xf32, #tpu.memory_space<vmem>>, vector<8x1xf32>
      tpu.vector_store %arg13[%c0_43, %c0_44], %82 {strides = array<i32>} : memref<8x1xf32, #tpu.memory_space<vmem>>, vector<8x1xf32>,
    } else {
    }
    %c0 = arith.constant 0 : index
    %c0_1 = arith.constant 0 : index
    %3 = vector.load %arg1[%c0, %c0_1] : memref<128x128xf32, #tpu.memory_space<vmem>>, vector<128x128xf32>
    %c0_2 = arith.constant 0 : index
    %c0_3 = arith.constant 0 : index
    %4 = vector.load %arg3[%c0_2, %c0_3] : memref<128x128xf32, #tpu.memory_space<vmem>>, vector<128x128xf32>
    %cst = arith.constant dense<0.000000e+00> : vector<128x128xf32>
    %5 = tpu.matmul %3, %4, %cst {dimension_numbers = #tpu.dot_dimension_numbers<[1], [0], [0], [1], [0, 0, 1, 1], [], []>} : vector<128x128xf32>, vector<128x128xf32>, vector<128x128xf32> -> vector<128x128xf32>
    %c0_4 = arith.constant 0 : index
    %c0_5 = arith.constant 0 : index
    %6 = vector.load %arg4[%c0_4, %c0_5] : memref<1x128xf32, #tpu.memory_space<vmem>>, vector<1x128xf32>
    %7 = vector.broadcast %6 : vector<1x128xf32> to vector<128x128xf32>
    %8 = arith.addf %5, %7 : vector<128x128xf32>
    %9 = arith.negf %8 : vector<128x128xf32>
    %10 = math.exp %9 : vector<128x128xf32>
    %cst_6 = arith.constant 1.000000e+00 : f32
    %11 = vector.broadcast %cst_6 : f32 to vector<128x128xf32>
    %12 = arith.addf %11, %10 : vector<128x128xf32>
    %13 = arith.divf %11, %12 : vector<128x128xf32>
    %14 = arith.mulf %8, %13 : vector<128x128xf32>
    %15 = vector.extract_strided_slice %14 {offsets = [0, 0], sizes = [128, 64], strides = [1, 1]} : vector<128x128xf32> to vector<128x64xf32>
    %16 = vector.extract_strided_slice %14 {offsets = [0, 64], sizes = [128, 64], strides = [1, 1]} : vector<128x128xf32> to vector<128x64xf32>
    %c0_7 = arith.constant 0 : index
    %c0_8 = arith.constant 0 : index
    %17 = vector.load %arg5[%c0_7, %c0_8] : memref<64x32xf32, #tpu.memory_space<vmem>>, vector<64x32xf32>
    %cst_9 = arith.constant dense<0.000000e+00> : vector<128x32xf32>
    %18 = tpu.matmul %15, %17, %cst_9 {dimension_numbers = #tpu.dot_dimension_numbers<[1], [0], [0], [1], [0, 0, 1, 1], [], []>} : vector<128x64xf32>, vector<64x32xf32>, vector<128x32xf32> -> vector<128x32xf32>
    %c0_10 = arith.constant 0 : index
    %c0_11 = arith.constant 0 : index
    %19 = vector.load %arg6[%c0_10, %c0_11] : memref<1x32xf32, #tpu.memory_space<vmem>>, vector<1x32xf32>
    %20 = vector.broadcast %19 : vector<1x32xf32> to vector<128x32xf32>
    %21 = arith.addf %18, %20 : vector<128x32xf32>
    %22 = arith.negf %21 : vector<128x32xf32>
    %23 = math.exp %22 : vector<128x32xf32>
    %cst_12 = arith.constant 1.000000e+00 : f32
    %24 = vector.broadcast %cst_12 : f32 to vector<128x32xf32>
    %25 = arith.addf %24, %23 : vector<128x32xf32>
    %26 = arith.divf %24, %25 : vector<128x32xf32>
    %27 = arith.mulf %21, %26 : vector<128x32xf32>
    %c0_13 = arith.constant 0 : index
    %c0_14 = arith.constant 0 : index
    %28 = vector.load %arg7[%c0_13, %c0_14] : memref<32x128xf32, #tpu.memory_space<vmem>>, vector<32x128xf32>
    %cst_15 = arith.constant dense<0.000000e+00> : vector<128x128xf32>
    %29 = tpu.matmul %27, %28, %cst_15 {dimension_numbers = #tpu.dot_dimension_numbers<[1], [0], [0], [1], [0, 0, 1, 1], [], []>} : vector<128x32xf32>, vector<32x128xf32>, vector<128x128xf32> -> vector<128x128xf32>
    %c0_16 = arith.constant 0 : index
    %c0_17 = arith.constant 0 : index
    %30 = vector.load %arg8[%c0_16, %c0_17] : memref<1x128xf32, #tpu.memory_space<vmem>>, vector<1x128xf32>
    %31 = vector.broadcast %30 : vector<1x128xf32> to vector<128x128xf32>
    %32 = arith.addf %29, %31 : vector<128x128xf32>
    %c0_18 = arith.constant 0 : index
    %c0_19 = arith.constant 0 : index
    %33 = vector.load %arg9[%c0_18, %c0_19] : memref<64x1xf32, #tpu.memory_space<vmem>>, vector<64x1xf32>
    %cst_20 = arith.constant dense<0.000000e+00> : vector<128x1xf32>
    %34 = tpu.matmul %16, %33, %cst_20 {dimension_numbers = #tpu.dot_dimension_numbers<[1], [0], [0], [1], [0, 0, 1, 1], [], []>} : vector<128x64xf32>, vector<64x1xf32>, vector<128x1xf32> -> vector<128x1xf32>
    %c0_21 = arith.constant 0 : index
    %c0_22 = arith.constant 0 : index
    %35 = vector.load %arg10[%c0_21, %c0_22] : memref<1x1xf32, #tpu.memory_space<vmem>>, vector<1x1xf32>
    %36 = vector.broadcast %35 : vector<1x1xf32> to vector<128x1xf32>
    %37 = arith.addf %34, %36 : vector<128x1xf32>
    %38 = arith.negf %37 : vector<128x1xf32>
    %39 = math.exp %38 : vector<128x1xf32>
    %cst_23 = arith.constant 1.000000e+00 : f32
    %40 = vector.broadcast %cst_23 : f32 to vector<128x1xf32>
    %41 = arith.addf %40, %39 : vector<128x1xf32>
    %42 = arith.divf %40, %41 : vector<128x1xf32>
    %43 = vector.broadcast %42 : vector<128x1xf32> to vector<128x128xf32>
    %44 = arith.mulf %43, %32 : vector<128x128xf32>
    %c0_24 = arith.constant 0 : index
    %c0_25 = arith.constant 0 : index
    %45 = vector.load %arg2[%c0_24, %c0_25] : memref<1x128xi32, #tpu.memory_space<vmem>>, vector<1x128xi32>
    %46 = tpu.iota {dimensions = array<i32: 0>} : vector<8x128xi32>
    %47 = vector.broadcast %45 : vector<1x128xi32> to vector<8x128xi32>
    %48 = arith.cmpi eq, %46, %47 : vector<8x128xi32>
    %c128_i32 = arith.constant 128 : i32
    %49 = arith.muli %arg0, %c128_i32 : i32
    %50 = tpu.iota {dimensions = array<i32: 1>} : vector<1x128xi32>
    %51 = vector.broadcast %49 : i32 to vector<1x128xi32>
    %52 = arith.addi %51, %50 : vector<1x128xi32>
    %c300_i32 = arith.constant 300 : i32
    %53 = vector.broadcast %c300_i32 : i32 to vector<1x128xi32>
    %54 = arith.cmpi slt, %52, %53 : vector<1x128xi32>
    %55 = vector.broadcast %54 : vector<1x128xi1> to vector<8x128xi1>
    %56 = arith.andi %48, %55 : vector<8x128xi1>
    %57 = tpu.iota {dimensions = array<i32: 0>} : vector<128x1xi32>
    %58 = vector.broadcast %49 : i32 to vector<128x1xi32>
    %59 = arith.addi %58, %57 : vector<128x1xi32>
    %c300_i32_26 = arith.constant 300 : i32
    %60 = vector.broadcast %c300_i32_26 : i32 to vector<128x1xi32>
    %61 = arith.cmpi slt, %59, %60 : vector<128x1xi32>
    %cst_27 = arith.constant 0.000000e+00 : f32
    %62 = vector.shape_cast %61 : vector<128x1xi1> to vector<128x1xi1>
    %63 = vector.broadcast %62 : vector<128x1xi1> to vector<128x128xi1>
    %64 = vector.broadcast %cst_27 : f32 to vector<128x128xf32>
    %65 = arith.select %63, %44, %64 : vector<128x128xi1>, vector<128x128xf32>
    %66 = arith.extui %56 : vector<8x128xi1> to vector<8x128xi32>
    %67 = arith.sitofp %66 : vector<8x128xi32> to vector<8x128xf32>
    %c0_28 = arith.constant 0 : index
    %c0_29 = arith.constant 0 : index
    %68 = vector.load %arg12[%c0_28, %c0_29] : memref<8x128xf32, #tpu.memory_space<vmem>>, vector<8x128xf32>
    %cst_30 = arith.constant dense<0.000000e+00> : vector<8x128xf32>
    %69 = tpu.matmul %67, %65, %cst_30 {dimension_numbers = #tpu.dot_dimension_numbers<[1], [0], [0], [1], [0, 0, 1, 1], [], []>} : vector<8x128xf32>, vector<128x128xf32>, vector<8x128xf32> -> vector<8x128xf32>
    %70 = arith.addf %68, %69 : vector<8x128xf32>
    %c0_31 = arith.constant 0 : index
    %c0_32 = arith.constant 0 : index
    %71 = vector.load %arg12[%c0_31, %c0_32] : memref<8x128xf32, #tpu.memory_space<vmem>>, vector<8x128xf32>
    tpu.vector_store %arg12[%c0_31, %c0_32], %70 {strides = array<i32>} : memref<8x128xf32, #tpu.memory_space<vmem>>, vector<8x128xf32>,
    %c0_33 = arith.constant 0 : index
    %c0_34 = arith.constant 0 : index
    %72 = vector.load %arg13[%c0_33, %c0_34] : memref<8x1xf32, #tpu.memory_space<vmem>>, vector<8x1xf32>
    %cst_35 = arith.constant dense<0.000000e+00> : vector<8xf32>
    %73 = vector.multi_reduction <add>, %67, %cst_35 [1] : vector<8x128xf32> to vector<8xf32>
    %74 = vector.shape_cast %73 : vector<8xf32> to vector<8x1xf32>
    %75 = arith.addf %72, %74 : vector<8x1xf32>
    %c0_36 = arith.constant 0 : index
    %c0_37 = arith.constant 0 : index
    %76 = vector.load %arg13[%c0_36, %c0_37] : memref<8x1xf32, #tpu.memory_space<vmem>>, vector<8x1xf32>
    tpu.vector_store %arg13[%c0_36, %c0_37], %75 {strides = array<i32>} : memref<8x1xf32, #tpu.memory_space<vmem>>, vector<8x1xf32>,
    %c2_i32 = arith.constant 2 : i32
    %77 = arith.cmpi eq, %arg0, %c2_i32 : i32
    %78 = arith.extui %77 : i1 to i32
    %c0_i32_38 = arith.constant 0 : i32
    %79 = arith.cmpi ne, %78, %c0_i32_38 : i32
    scf.if %79 {
      %c0_39 = arith.constant 0 : index
      %c0_40 = arith.constant 0 : index
      %80 = vector.load %arg12[%c0_39, %c0_40] : memref<8x128xf32, #tpu.memory_space<vmem>>, vector<8x128xf32>
      %c0_41 = arith.constant 0 : index
      %c0_42 = arith.constant 0 : index
      %81 = vector.load %arg13[%c0_41, %c0_42] : memref<8x1xf32, #tpu.memory_space<vmem>>, vector<8x1xf32>
      %cst_43 = arith.constant 1.000000e+00 : f32
      %82 = vector.broadcast %cst_43 : f32 to vector<8x1xf32>
      %83 = arith.addf %81, %82 : vector<8x1xf32>
      %84 = vector.broadcast %83 : vector<8x1xf32> to vector<8x128xf32>
      %85 = arith.divf %80, %84 : vector<8x128xf32>
      %c0_44 = arith.constant 0 : index
      %c0_45 = arith.constant 0 : index
      %86 = vector.load %arg11[%c0_44, %c0_45] : memref<8x128xf32, #tpu.memory_space<vmem>>, vector<8x128xf32>
      tpu.vector_store %arg11[%c0_44, %c0_45], %85 {strides = array<i32>} : memref<8x128xf32, #tpu.memory_space<vmem>>, vector<8x128xf32>,
    } else {
    }
    return
  }
  func.func @transform_0(%arg0: i32) -> (i32, i32) {
    %c0_i32 = arith.constant 0 : i32
    %c0_i32_0 = arith.constant 0 : i32
    return %arg0, %c0_i32 : i32, i32
  }
  func.func @transform_1(%arg0: i32) -> (i32, i32) {
    %c0_i32 = arith.constant 0 : i32
    %c0_i32_0 = arith.constant 0 : i32
    return %c0_i32, %arg0 : i32, i32
  }
  func.func @transform_2(%arg0: i32) -> (i32, i32) {
    %c0_i32 = arith.constant 0 : i32
    %c0_i32_0 = arith.constant 0 : i32
    %c0_i32_1 = arith.constant 0 : i32
    return %c0_i32, %c0_i32_0 : i32, i32
  }
  func.func @transform_3(%arg0: i32) -> (i32, i32) {
    %c0_i32 = arith.constant 0 : i32
    %c0_i32_0 = arith.constant 0 : i32
    %c0_i32_1 = arith.constant 0 : i32
    return %c0_i32, %c0_i32_0 : i32, i32
  }
  func.func @transform_4(%arg0: i32) -> (i32, i32) {
    %c0_i32 = arith.constant 0 : i32
    %c0_i32_0 = arith.constant 0 : i32
    %c0_i32_1 = arith.constant 0 : i32
    return %c0_i32, %c0_i32_0 : i32, i32
  }
  func.func @transform_5(%arg0: i32) -> (i32, i32) {
    %c0_i32 = arith.constant 0 : i32
    %c0_i32_0 = arith.constant 0 : i32
    %c0_i32_1 = arith.constant 0 : i32
    return %c0_i32, %c0_i32_0 : i32, i32
  }
  func.func @transform_6(%arg0: i32) -> (i32, i32) {
    %c0_i32 = arith.constant 0 : i32
    %c0_i32_0 = arith.constant 0 : i32
    %c0_i32_1 = arith.constant 0 : i32
    return %c0_i32, %c0_i32_0 : i32, i32
  }
  func.func @transform_7(%arg0: i32) -> (i32, i32) {
    %c0_i32 = arith.constant 0 : i32
    %c0_i32_0 = arith.constant 0 : i32
    %c0_i32_1 = arith.constant 0 : i32
    return %c0_i32, %c0_i32_0 : i32, i32
  }
  func.func @transform_8(%arg0: i32) -> (i32, i32) {
    %c0_i32 = arith.constant 0 : i32
    %c0_i32_0 = arith.constant 0 : i32
    %c0_i32_1 = arith.constant 0 : i32
    return %c0_i32, %c0_i32_0 : i32, i32
  }
  func.func @transform_9(%arg0: i32) -> (i32, i32) {
    %c0_i32 = arith.constant 0 : i32
    %c0_i32_0 = arith.constant 0 : i32
    %c0_i32_1 = arith.constant 0 : i32
    return %c0_i32, %c0_i32_0 : i32, i32
  }
  func.func @transform_10(%arg0: i32) -> (i32, i32) {
    %c0_i32 = arith.constant 0 : i32
    %c0_i32_0 = arith.constant 0 : i32
    %c0_i32_1 = arith.constant 0 : i32
    return %c0_i32, %c0_i32_0 : i32, i32
  }
}

</mosaic_0001>

<bundles_post_ra>
// kernel: weighted_average.1
= control target key start
LH: loop header
LB: loop body
LE: loop exit
PB: predicated region body
PF: predicated region fallthrough
CT: control target
= control target key end

     0   :  { %s3223_s0 = inlined_call_operand.vmem [shape: f32[300,128], index: 0, kind: input, shape index: {}]   ;;  %s3224_s1 = inlined_call_operand.vmem [shape: s32[1,300], index: 1, kind: input, shape index: {}]   ;;  %s3225_s2 = inlined_call_operand.vmem [shape: f32[128,128], index: 2, kind: input, shape index: {}]   ;;  %s3226_s3 = inlined_call_operand.vmem [shape: f32[1,128], index: 3, kind: input, shape index: {}]   ;;  %s3227_s4 = inlined_call_operand.vmem [shape: f32[64,32], index: 4, kind: input, shape index: {}]   ;;  %s3228_s5 = inlined_call_operand.vmem [shape: f32[1,32], index: 5, kind: input, shape index: {}]   ;;  %s3229_s6 = inlined_call_operand.vmem [shape: f32[32,128], index: 6, kind: input, shape index: {}]   ;;  %s3230_s7 = inlined_call_operand.vmem [shape: f32[1,128], index: 7, kind: input, shape index: {}]   ;;  %s3231_s8 = inlined_call_operand.vmem [shape: f32[64,1], index: 8, kind: input, shape index: {}]   ;;  %s3232_s9 = inlined_call_operand.<no memory space> [shape: f32[1,1], index: 9, kind: input, shape index: {}]   ;;  %s3233_s10 = inlined_call_operand.hbm [shape: f32[8,128], index: 10, kind: output, shape index: {}]  }
   0x1   :  { %v15_v0 = vstv %s3232_s9 }
   0x2   :  { %16 = vst [vmem:[#allocation4] sm:$0x1] %v15_v0 }
   0x3   :  { %17 = vsyncpa [#allocation6], 0  ;;  %s2665_s15 = smov 0  }
   0x4 LB: > { %s2671_s16 = sadd.s32 4294967295, %s2597_s15   ;;  %p1895_p0 = scmp.ge.s32.totalorder %s2597_s15, 1  ;;  %s2597_s15 = sphi %s2665_s15, %s23_s15  }
   0x5   : > { %p327_p1 = scmp.lt.s32.totalorder %s2597_s15, 4 }
   0x7   : > { %p328_p2 = pnand %p1895_p0, %p327_p1 }
   0x8   : > { %s1896_s9 = sshll.u32 (!%p328_p2), %s2671_s16, 4  ;;  %p381_p3 = scmp.lt.s32.totalorder (!%p328_p2), %s2671_s16, 2 }
   0x9   : > { %331 = sbr.rel (%p328_p2) target bundleno = 1174 (0x496), region = 60  ;;  %p372_p4 = scmp.lt.s32.totalorder (!%p328_p2), %s1896_s9, 37 }
   0xa   : > { %p1898_p5 = scmp.ne.s32.totalorder (!%p328_p2), %s2671_s16, 0 }
   0xe   : > { %s2678_s17 = scalar_select %p381_p3, %s2671_s16, 2 }
   0xf   : > { %s3237_s9 = smov (!%p372_p4, %s1896_s9), 37  ;;  %387 = sbr.rel (%p1898_p5) target bundleno = 22 (0x16), region = 64 }
  0x10   : > { %s383_s20 = scalar_lea.vmem %s3224_s1, %s2678_s17  ;;  %s1897_s21 = sshll.u32 %s3237_s9, 3 }
  0x11   : > { %s2687_s24 = scalar_lea.vmem %s3223_s0, %s1897_s21 }
  0x14   : > { %vm389_vm0 = vcmask 7168   ;;  %v2599_v1 = vmov 0.0  }
  0x15   : > { %388 = vst [vmem:[#allocation2] sm:$0xff] %v2599_v1  ;;  %390 = vst.msk [vmem:[#allocation3] sm:$0xff] %vm389_vm0, %v2599_v1 }
  0x16 PF: > { %v422_v2 = vld [vmem:[%s3225_s2 + $0x78] sm:$0xff]  ;;  %v421_v3 = vld [vmem:[%s3225_s2 + $0x70] sm:$0xff]  ;;  %v420_v4 = vld [vmem:[%s3225_s2 + $0x68] sm:$0xff]  ;;  %vm702_vm1 = vcmask 523264   ;;  %s2600_s25 = smov 64   ;;  %vm1019_vm2 = vcmask 261120  }
  0x17   : > { %2141 = vmatprep.subr.mxu0 %v422_v2  ;;  %v419_v5 = vld [vmem:[%s3225_s2 + $0x60] sm:$0xff]  ;;  %v418_v7 = vld [vmem:[%s3225_s2 + $0x58] sm:$0xff]  ;;  %v417_v8 = vld [vmem:[%s3225_s2 + $0x50] sm:$0xff]  ;;  %s2000_s9 = sshll.u32 %s2671_s16, 7  ;;  %vm2603_vm3 = vmmov 0   ;;  %p2019_p6 = scmp.ne.s32.totalorder %s2671_s16, 2 }
  0x18   : > { %2142 = vmatpush3.msra.mxu0 %v422_v2  ;;  %v391_v6 = vld [vmem:[%s2687_s24] sm:$0xff]  ;;  %v416_v9 = vld [vmem:[%s3225_s2 + $0x48] sm:$0xff]  ;;  %v414_v11 = vld [vmem:[%s3225_s2 + $0x38] sm:$0xff] }
  0x19   : > { %2143 = vmatprep.subr.mxu0 %v421_v3  ;;  %2173 = vmatprep.mubr.f32.mxu0 %v391_v6  ;;  %v415_v10 = vld [vmem:[%s3225_s2 + $0x40] sm:$0xff]  ;;  %v413_v12 = vld [vmem:[%s3225_s2 + $0x30] sm:$0xff]  ;;  %v412_v13 = vld [vmem:[%s3225_s2 + $0x28] sm:$0xff] }
  0x1a   : > { %2144 = vmatpush3.msra.mxu0 %v421_v3  ;;  %v411_v14 = vld [vmem:[%s3225_s2 + $0x20] sm:$0xff]  ;;  %v410_v15 = vld [vmem:[%s3225_s2 + $0x18] sm:$0xff]  ;;  %v409_v16 = vld [vmem:[%s3225_s2 + $0x10] sm:$0xff] }
  0x1b   : > { %2145 = vmatprep.subr.mxu0 %v420_v4  ;;  %v408_v17 = vld [vmem:[%s3225_s2 + $0x8] sm:$0xff]  ;;  %v407_v18 = vld [vmem:[%s3225_s2] sm:$0xff]  ;;  %v393_v20 = vld [vmem:[%s2687_s24 + $0x10] sm:$0xff] }
  0x1c   : > { %2146 = vmatpush3.msra.mxu0 %v420_v4  ;;  %v392_v19 = vld [vmem:[%s2687_s24 + $0x8] sm:$0xff]  ;;  %v394_v21 = vld [vmem:[%s2687_s24 + $0x18] sm:$0xff]  ;;  %v395_v22 = vld [vmem:[%s2687_s24 + $0x20] sm:$0xff] }
  0x1d   : > { %2147 = vmatprep.subr.mxu0 %v419_v5  ;;  %v396_v23 = vld [vmem:[%s2687_s24 + $0x28] sm:$0xff]  ;;  %v397_v24 = vld [vmem:[%s2687_s24 + $0x30] sm:$0xff]  ;;  %v398_v25 = vld [vmem:[%s2687_s24 + $0x38] sm:$0xff] }
  0x1e   : > { %2148 = vmatpush3.msra.mxu0 %v419_v5  ;;  %v399_v26 = vld [vmem:[%s2687_s24 + $0x40] sm:$0xff]  ;;  %v400_v27 = vld [vmem:[%s2687_s24 + $0x48] sm:$0xff]  ;;  %v401_v28 = vld [vmem:[%s2687_s24 + $0x50] sm:$0xff] }
  0x1f   : > { %2149 = vmatprep.subr.mxu0 %v418_v7  ;;  %v402_v29 = vld [vmem:[%s2687_s24 + $0x58] sm:$0xff]  ;;  %v403_v30 = vld [vmem:[%s2687_s24 + $0x60] sm:$0xff]  ;;  %v404_v31 = vld [vmem:[%s2687_s24 + $0x68] sm:$0xff] }
  0x20   : > { %2150 = vmatpush3.msra.mxu0 %v418_v7  ;;  %v405_v32 = vld [vmem:[%s2687_s24 + $0x70] sm:$0xff]  ;;  %v406_v33 = vld [vmem:[%s2687_s24 + $0x78] sm:$0xff]  ;;  %v692_v36 = vld [vmem:[%s3227_s4 + $0x28] sm:$0xff] }
  0x21   : > { %2151 = vmatprep.subr.mxu0 %v417_v8  ;;  %v694_v34 = vld [vmem:[%s3227_s4 + $0x38] sm:$0xff]  ;;  %v693_v35 = vld [vmem:[%s3227_s4 + $0x30] sm:$0xff]  ;;  %v691_v37 = vld [vmem:[%s3227_s4 + $0x20] sm:$0xff] }
  0x22   : > { %2152 = vmatpush3.msra.mxu0 %v417_v8  ;;  %2197 = vmatprep.subr.mxu1 %v694_v34  ;;  %v690_v38 = vld [vmem:[%s3227_s4 + $0x18] sm:$0xff]  ;;  %v689_v39 = vld [vmem:[%s3227_s4 + $0x10] sm:$0xff]  ;;  %v688_v40 = vld [vmem:[%s3227_s4 + $0x8] sm:$0xff] }
  0x23   : > { %2153 = vmatprep.subr.mxu0 %v416_v9  ;;  %2198 = vmatpush3.msra.mxu1 %v694_v34  ;;  %v687_v41 = vld [vmem:[%s3227_s4] sm:$0xff]  ;;  %v1220_v42 = vld [vmem:[%s3231_s8 + $0x38] sm:$0xff]  ;;  %v1219_v43 = vld [vmem:[%s3231_s8 + $0x30] sm:$0xff] }
  0x24   : > { %2154 = vmatpush3.msra.mxu0 %v416_v9  ;;  %2199 = vmatprep.subr.mxu1 %v693_v35  ;;  %v1218_v44 = vld [vmem:[%s3231_s8 + $0x28] sm:$0xff]  ;;  %v1217_v45 = vld [vmem:[%s3231_s8 + $0x20] sm:$0xff]  ;;  %v1216_v46 = vld [vmem:[%s3231_s8 + $0x18] sm:$0xff] }
  0x25   : > { %2155 = vmatprep.subr.mxu0 %v415_v10  ;;  %2200 = vmatpush3.msra.mxu1 %v693_v35  ;;  %v1215_v47 = vld [vmem:[%s3231_s8 + $0x10] sm:$0xff]  ;;  %v1214_v48 = vld [vmem:[%s3231_s8 + $0x8] sm:$0xff]  ;;  %v2802_v49 = vld [vmem:[%s3226_s3] ss:$0 sm:$0xff] }
  0x26   : > { %2156 = vmatpush3.msra.mxu0 %v415_v10  ;;  %2201 = vmatprep.subr.mxu1 %v692_v36 }
  0x27   : > { %2157 = vmatprep.subr.mxu0 %v414_v11  ;;  %2202 = vmatpush3.msra.mxu1 %v692_v36 }
  0x28   : > { %2158 = vmatpush3.msra.mxu0 %v414_v11  ;;  %2203 = vmatprep.subr.mxu1 %v691_v37 }
  0x29   : > { %2159 = vmatprep.subr.mxu0 %v413_v12  ;;  %2204 = vmatpush3.msra.mxu1 %v691_v37 }
  0x2a   : > { %2160 = vmatpush3.msra.mxu0 %v413_v12  ;;  %2205 = vmatprep.subr.mxu1 %v690_v38 }
  0x2b   : > { %2161 = vmatprep.subr.mxu0 %v412_v13  ;;  %2206 = vmatpush3.msra.mxu1 %v690_v38 }
  0x2c   : > { %2162 = vmatpush3.msra.mxu0 %v412_v13  ;;  %2207 = vmatprep.subr.mxu1 %v689_v39 }
  0x2d   : > { %2163 = vmatprep.subr.mxu0 %v411_v14  ;;  %2208 = vmatpush3.msra.mxu1 %v689_v39 }
  0x2e   : > { %2164 = vmatpush3.msra.mxu0 %v411_v14  ;;  %2209 = vmatprep.subr.mxu1 %v688_v40 }
  0x2f   : > { %2165 = vmatprep.subr.mxu0 %v410_v15  ;;  %2210 = vmatpush3.msra.mxu1 %v688_v40 }
  0x30   : > { %2166 = vmatpush3.msra.mxu0 %v410_v15  ;;  %2211 = vmatprep.subr.mxu1 %v687_v41 }
  0x31   : > { %2167 = vmatprep.subr.mxu0 %v409_v16  ;;  %2212 = vmatpush3.msra.mxu1 %v687_v41 }
  0x32   : > { %2168 = vmatpush3.msra.mxu0 %v409_v16 }
  0x33   : > { %2169 = vmatprep.subr.mxu0 %v408_v17 }
  0x34   : > { %2170 = vmatpush3.msra.mxu0 %v408_v17 }
  0x35   : > { %2171 = vmatprep.subr.mxu0 %v407_v18 }
  0x36   : > { %2172 = vmatpush3.msra.mxu0 %v407_v18 }
  0x37   : > { %2174 = vmatmul.mubr.f32.vlgmr.msra.gmra.mxu0 %v392_v19  ;;  %2269 = vmatprep.subr.mxu0 %v1220_v42 }
  0x38   : > { %2176 = vmatprep.mubr.f32.mxu0 %v393_v20  ;;  %2270 = vmatpush3.msra.mxu0 %v1220_v42 }
  0x39   : > { %2271 = vmatprep.subr.mxu0 %v1219_v43 }
  0x3a   : > { %2272 = vmatpush3.msra.mxu0 %v1219_v43 }
  0x3b   : > { %2177 = vmatmul.mubr.f32.gmra.mxu0 %v394_v21  ;;  %2273 = vmatprep.subr.mxu0 %v1218_v44 }
  0x3c   : > { %2179 = vmatprep.mubr.f32.mxu0 %v395_v22  ;;  %2274 = vmatpush3.msra.mxu0 %v1218_v44 }
  0x3d   : > { %2275 = vmatprep.subr.mxu0 %v1217_v45 }
  0x3e   : > { %2276 = vmatpush3.msra.mxu0 %v1217_v45 }
  0x3f   : > { %2180 = vmatmul.mubr.f32.gmra.mxu0 %v396_v23  ;;  %2277 = vmatprep.subr.mxu0 %v1216_v46 }
  0x40   : > { %2182 = vmatprep.mubr.f32.mxu0 %v397_v24  ;;  %2278 = vmatpush3.msra.mxu0 %v1216_v46 }
  0x41   : > { %2279 = vmatprep.subr.mxu0 %v1215_v47 }
  0x42   : > { %2280 = vmatpush3.msra.mxu0 %v1215_v47 }
  0x43   : > { %2183 = vmatmul.mubr.f32.gmra.mxu0 %v398_v25  ;;  %2281 = vmatprep.subr.mxu0 %v1214_v48 }
  0x44   : > { %2185 = vmatprep.mubr.f32.mxu0 %v399_v26  ;;  %2282 = vmatpush3.msra.mxu0 %v1214_v48 }
  0x47   : > { %2186 = vmatmul.mubr.f32.gmra.mxu0 %v400_v27 }
  0x48   : > { %2188 = vmatprep.mubr.f32.mxu0 %v401_v28 }
  0x4b   : > { %2189 = vmatmul.mubr.f32.gmra.mxu0 %v402_v29 }
  0x4c   : > { %2191 = vmatprep.mubr.f32.mxu0 %v403_v30 }
  0x4f   : > { %2192 = vmatmul.mubr.f32.gmra.mxu0 %v404_v31 }
  0x50   : > { %2194 = vmatprep.mubr.f32.mxu0 %v405_v32  ;;  %v1213_v32 = vld [vmem:[%s3231_s8] sm:$0xff] }
  0x51   : > { %2283 = vmatprep.subr.mxu0 %v1213_v32 }
  0x52   : > { %2284 = vmatpush3.msra.mxu0 %v1213_v32 }
  0x53   : > { %2195 = vmatmul.mubr.f32.gmra.mxu0 %v406_v33 }
  0xf7   : > { %v2175_v50 = vpop.f32.mrf.mxu0 }
  0xf8   : > { %v2805_v51 = vadd.f32 %v2175_v50, %v2802_v49 }
  0xf9   : > { %v496_v52 = vpop.f32.mrf.mxu0 }
  0xfa   : > { %v1901_v53 = vmul.f32 -1.442695, %v2805_v51  ;;  %v2809_v54 = vadd.f32 %v2802_v49, %v496_v52 }
  0xfb   : > { %v2178_v55 = vpop.f32.mrf.mxu0 }
  0xfc   : > { %2368 = vpow2.f32 %v1901_v53  ;;  %v1900_v56 = vmul.f32 -1.442695, %v2809_v54  ;;  %v2813_v57 = vadd.f32 %v2178_v55, %v2802_v49 }
  0xfd   : > { %v506_v58 = vpop.f32.mrf.mxu0 }
  0xfe   : > { %2370 = vpow2.f32 %v1900_v56  ;;  %v1903_v59 = vmul.f32 -1.442695, %v2813_v57  ;;  %v2817_v60 = vadd.f32 %v2802_v49, %v506_v58 }
  0xff   : > { %v2181_v61 = vpop.f32.mrf.mxu0 }
 0x100   : > { %2372 = vpow2.f32 %v1903_v59  ;;  %v1902_v62 = vmul.f32 -1.442695, %v2817_v60  ;;  %v2821_v63 = vadd.f32 %v2181_v61, %v2802_v49 }
 0x101   : > { %v516_v0 = vpop.f32.mrf.mxu0 }
 0x102   : > { %2374 = vpow2.f32 %v1902_v62  ;;  %v1905_v1 = vmul.f32 -1.442695, %v2821_v63  ;;  %v2825_v2 = vadd.f32 %v2802_v49, %v516_v0 }
 0x103   : > { %v2184_v3 = vpop.f32.mrf.mxu0 }
 0x104   : > { %2376 = vpow2.f32 %v1905_v1  ;;  %v1904_v4 = vmul.f32 -1.442695, %v2825_v2  ;;  %v2829_v5 = vadd.f32 %v2184_v3, %v2802_v49 }
 0x105   : > { %v526_v6 = vpop.f32.mrf.mxu0 }
 0x106   : > { %2378 = vpow2.f32 %v1904_v4  ;;  %v1907_v7 = vmul.f32 -1.442695, %v2829_v5  ;;  %v2833_v8 = vadd.f32 %v2802_v49, %v526_v6 }
 0x107   : > { %v2187_v9 = vpop.f32.mrf.mxu0 }
 0x108   : > { %2380 = vpow2.f32 %v1907_v7  ;;  %v1906_v10 = vmul.f32 -1.442695, %v2833_v8  ;;  %v2837_v11 = vadd.f32 %v2187_v9, %v2802_v49 }
 0x109   : > { %v2369_v12 = vpop.eup %2368  ;;  %v536_v13 = vpop.f32.mrf.mxu0 }
 0x10a   : > { %v624_v14 = vadd.f32 1.0, %v2369_v12  ;;  %2382 = vpow2.f32 %v1906_v10  ;;  %v1909_v15 = vmul.f32 -1.442695, %v2837_v11  ;;  %v2841_v16 = vadd.f32 %v2802_v49, %v536_v13 }
 0x10b   : > { %v2371_v17 = vpop.eup %2370  ;;  %v2190_v18 = vpop.f32.mrf.mxu0 }
 0x10c   : > { %2384 = vrcp.f32 %v624_v14  ;;  %v623_v19 = vadd.f32 1.0, %v2371_v17  ;;  %v1908_v20 = vmul.f32 -1.442695, %v2841_v16  ;;  %v2845_v21 = vadd.f32 %v2190_v18, %v2802_v49 }
 0x10d   : > { %v2373_v22 = vpop.eup %2372  ;;  %2386 = vpow2.f32 %v1909_v15  ;;  %v546_v23 = vpop.f32.mrf.mxu0 }
 0x10e   : > { %2388 = vrcp.f32 %v623_v19  ;;  %v626_v24 = vadd.f32 1.0, %v2373_v22  ;;  %v1911_v25 = vmul.f32 -1.442695, %v2845_v21  ;;  %v2849_v26 = vadd.f32 %v2802_v49, %v546_v23 }
 0x10f   : > { %v2375_v27 = vpop.eup %2374  ;;  %2390 = vpow2.f32 %v1908_v20  ;;  %v2193_v28 = vpop.f32.mrf.mxu0 }
 0x110   : > { %2392 = vrcp.f32 %v626_v24  ;;  %v625_v29 = vadd.f32 1.0, %v2375_v27  ;;  %v1910_v30 = vmul.f32 -1.442695, %v2849_v26  ;;  %v2853_v31 = vadd.f32 %v2193_v28, %v2802_v49 }
 0x111   : > { %v2377_v33 = vpop.eup %2376  ;;  %2394 = vpow2.f32 %v1911_v25  ;;  %v556_v34 = vpop.f32.mrf.mxu0 }
 0x112   : > { %2396 = vrcp.f32 %v625_v29  ;;  %v628_v35 = vadd.f32 1.0, %v2377_v33  ;;  %v1913_v36 = vmul.f32 -1.442695, %v2853_v31  ;;  %v2860_v37 = vadd.f32 %v2802_v49, %v556_v34 }
 0x113   : > { %v2379_v38 = vpop.eup %2378  ;;  %2398 = vpow2.f32 %v1910_v30  ;;  %v2196_v39 = vpop.f32.mrf.mxu0 }
 0x114   : > { %2400 = vrcp.f32 %v628_v35  ;;  %v627_v40 = vadd.f32 1.0, %v2379_v38  ;;  %v1912_v41 = vmul.f32 -1.442695, %v2860_v37  ;;  %v2864_v42 = vadd.f32 %v2196_v39, %v2802_v49  ;;  %v1008_v38 = vld [vmem:[%s3229_s6] sm:$0xff] }
 0x115   : > { %v2381_v43 = vpop.eup %2380  ;;  %2402 = vpow2.f32 %v1913_v36  ;;  %v566_v44 = vpop.f32.mrf.mxu0  ;;  %v1010_v36 = vld [vmem:[%s3229_s6 + $0x10] sm:$0xff] }
 0x116   : > { %2404 = vrcp.f32 %v627_v40  ;;  %v630_v45 = vadd.f32 1.0, %v2381_v43  ;;  %v1915_v46 = vmul.f32 -1.442695, %v2864_v42  ;;  %v2868_v47 = vadd.f32 %v2802_v49, %v566_v44 }
 0x117   : > { %v2383_v48 = vpop.eup %2382  ;;  %2406 = vpow2.f32 %v1912_v41 }
 0x118   : > { %2408 = vrcp.f32 %v630_v45  ;;  %v629_v50 = vadd.f32 1.0, %v2383_v48  ;;  %v1914_v52 = vmul.f32 -1.442695, %v2868_v47 }
 0x119   : > { %v2385_v53 = vpop.eup %2384  ;;  %2410 = vpow2.f32 %v1915_v46 }
 0x11a   : > { %v2387_v55 = vpop.eup %2386  ;;  %2412 = vrcp.f32 %v629_v50  ;;  %v672_v49 = vmul.f32 %v2385_v53, %v2805_v51 }
 0x11b   : > { %v2389_v56 = vpop.eup %2388  ;;  %v632_v58 = vadd.f32 1.0, %v2387_v55  ;;  %2414 = vpow2.f32 %v1914_v52 }
 0x11c   : > { %v2391_v59 = vpop.eup %2390  ;;  %v671_v61 = vmul.f32 %v2389_v56, %v2809_v54 }
 0x11d   : > { %v2393_v62 = vpop.eup %2392  ;;  %v631_v0 = vadd.f32 1.0, %v2391_v59  ;;  %2416 = vrcp.f32 %v632_v58  ;;  %v2950_v59 = vld [vmem:[%s3228_s5] ss:$0 sm:$0xff] }
 0x11e   : > { %v2395_v1 = vpop.eup %2394  ;;  %1228 = vrot.lane.b32.xlu0 %v671_v61, %s2600_s25  ;;  %2213 = vmatprep.mubr.msk.f32.mxu1 %vm702_vm1, %v671_v61  ;;  %v674_v51 = vmul.f32 %v2393_v62, %v2813_v57 }
 0x11f   : > { %v2397_v3 = vpop.eup %2396  ;;  %2418 = vrcp.f32 %v631_v0  ;;  %v634_v4 = vadd.f32 1.0, %v2395_v1  ;;  %2214 = vmatmul.mubr.msk.f32.vlgmr.msra.gmra.mxu1 %vm702_vm1, %v672_v49 }
 0x120   : > { %v2399_v6 = vpop.eup %2398  ;;  %v673_v7 = vmul.f32 %v2397_v3, %v2817_v60 }
 0x121   : > { %v2401_v54 = vpop.eup %2400  ;;  %v633_v9 = vadd.f32 1.0, %v2399_v6  ;;  %2420 = vrcp.f32 %v634_v4 }
 0x122   : > { %v2403_v10 = vpop.eup %2402  ;;  %1232 = vrot.lane.b32.xlu1 %v673_v7, %s2600_s25  ;;  %1230 = vrot.lane.b32.xlu0 %v672_v49, %s2600_s25  ;;  %v676_v57 = vmul.f32 %v2401_v54, %v2821_v63 }
 0x123   : > { %v2405_v12 = vpop.eup %2404  ;;  %2422 = vrcp.f32 %v633_v9  ;;  %v636_v13 = vadd.f32 1.0, %v2403_v10  ;;  %2216 = vmatprep.mubr.msk.f32.mxu1 %vm702_vm1, %v673_v7 }
 0x124   : > { %v2407_v14 = vpop.eup %2406  ;;  %v675_v15 = vmul.f32 %v2405_v12, %v2825_v2  ;;  %2217 = vmatmul.mubr.msk.f32.gmra.mxu1 %vm702_vm1, %v674_v51 }
 0x125   : > { %v2409_v60 = vpop.eup %2408  ;;  %v635_v17 = vadd.f32 1.0, %v2407_v14  ;;  %2424 = vrcp.f32 %v636_v13 }
 0x126   : > { %v2411_v18 = vpop.eup %2410  ;;  %1234 = vrot.lane.b32.xlu1 %v674_v51, %s2600_s25  ;;  %1236 = vrot.lane.b32.xlu0 %v675_v15, %s2600_s25  ;;  %v678_v24 = vmul.f32 %v2409_v60, %v2829_v5 }
 0x127   : > { %v2413_v19 = vpop.eup %2412  ;;  %2426 = vrcp.f32 %v635_v17  ;;  %v638_v20 = vadd.f32 1.0, %v2411_v18  ;;  %2219 = vmatprep.mubr.msk.f32.mxu1 %vm702_vm1, %v675_v15 }
 0x128   : > { %v2415_v22 = vpop.eup %2414  ;;  %v677_v2 = vmul.f32 %v2413_v19, %v2833_v8  ;;  %2220 = vmatmul.mubr.msk.f32.gmra.mxu1 %vm702_vm1, %v676_v57 }
 0x129   : > { %v637_v23 = vadd.f32 1.0, %v2415_v22  ;;  %2428 = vrcp.f32 %v638_v20 }
 0x12a   : > { %1238 = vrot.lane.b32.xlu1 %v676_v57, %s2600_s25  ;;  %1240 = vrot.lane.b32.xlu0 %v677_v2, %s2600_s25  ;;  %v2417_v63 = vpop.eup %2416 }
 0x12b   : > { %2430 = vrcp.f32 %v637_v23  ;;  %2222 = vmatprep.mubr.msk.f32.mxu1 %vm702_vm1, %v677_v2  ;;  %v680_v8 = vmul.f32 %v2417_v63, %v2837_v11 }
 0x12c   : > { %v2419_v25 = vpop.eup %2418  ;;  %2223 = vmatmul.mubr.msk.f32.gmra.mxu1 %vm702_vm1, %v678_v24 }
 0x12d   : > { %v679_v27 = vmul.f32 %v2419_v25, %v2841_v16 }
 0x12e   : > { %1242 = vrot.lane.b32.xlu1 %v678_v24, %s2600_s25  ;;  %v2421_v28 = vpop.eup %2420 }
 0x12f   : > { %1244 = vrot.lane.b32.xlu0 %v679_v27, %s2600_s25  ;;  %2225 = vmatprep.mubr.msk.f32.mxu1 %vm702_vm1, %v679_v27  ;;  %v682_v30 = vmul.f32 %v2421_v28, %v2845_v21 }
 0x130   : > { %v2423_v5 = vpop.eup %2422  ;;  %2226 = vmatmul.mubr.msk.f32.gmra.mxu1 %vm702_vm1, %v680_v8 }
 0x131   : > { %v681_v29 = vmul.f32 %v2423_v5, %v2849_v26 }
 0x132   : > { %1246 = vrot.lane.b32.xlu1 %v680_v8, %s2600_s25  ;;  %v2425_v32 = vpop.eup %2424 }
 0x133   : > { %1248 = vrot.lane.b32.xlu0 %v681_v29, %s2600_s25  ;;  %2228 = vmatprep.mubr.msk.f32.mxu1 %vm702_vm1, %v681_v29  ;;  %v684_v33 = vmul.f32 %v2425_v32, %v2853_v31  ;;  %v1011_v31 = vld [vmem:[%s3229_s6 + $0x18] sm:$0xff] }
 0x134   : > { %v2427_v11 = vpop.eup %2426  ;;  %2229 = vmatmul.mubr.msk.f32.gmra.mxu1 %vm702_vm1, %v682_v30  ;;  %2237 = vmatprep.subr.mxu1 %v1011_v31 }
 0x135   : > { %v683_v16 = vmul.f32 %v2427_v11, %v2860_v37  ;;  %2238 = vmatpush3.msra.mxu1 %v1011_v31  ;;  %v1009_v37 = vld [vmem:[%s3229_s6 + $0x8] sm:$0xff] }
 0x136   : > { %1250 = vrot.lane.b32.xlu1 %v682_v30, %s2600_s25  ;;  %v2429_v34 = vpop.eup %2428  ;;  %2239 = vmatprep.subr.mxu1 %v1010_v36 }
 0x137   : > { %1252 = vrot.lane.b32.xlu0 %v683_v16, %s2600_s25  ;;  %2231 = vmatprep.mubr.msk.f32.mxu1 %vm702_vm1, %v683_v16  ;;  %v686_v35 = vmul.f32 %v2429_v34, %v2864_v42 }
 0x138   : > { %v2431_v21 = vpop.eup %2430  ;;  %2232 = vmatmul.mubr.msk.f32.gmra.mxu1 %vm702_vm1, %v684_v33 }
 0x139   : > { %v685_v26 = vmul.f32 %v2431_v21, %v2868_v47  ;;  %2240 = vmatpush3.msra.mxu1 %v1010_v36 }
 0x13a   : > { %1254 = vrot.lane.b32.xlu1 %v684_v33, %s2600_s25  ;;  %2241 = vmatprep.subr.mxu1 %v1009_v37 }
 0x13b   : > { %1256 = vrot.lane.b32.xlu0 %v685_v26, %s2600_s25  ;;  %2234 = vmatprep.mubr.msk.f32.mxu1 %vm702_vm1, %v685_v26 }
 0x13c   : > { %2235 = vmatmul.mubr.msk.f32.gmra.mxu1 %vm702_vm1, %v686_v35 }
 0x13d   : > { %2242 = vmatpush3.msra.mxu1 %v1009_v37 }
 0x13e   : > { %1258 = vrot.lane.b32.xlu1 %v686_v35, %s2600_s25  ;;  %2243 = vmatprep.subr.mxu1 %v1008_v38 }
 0x13f   : > { %2244 = vmatpush3.msra.mxu1 %v1008_v38 }
 0x190   : > { %v1229_v39 = vpop.permute.xlu0 %1228 }
 0x191   : > { %2285 = vmatprep.mubr.msk.f32.mxu0 %vm702_vm1, %v1229_v39 }
 0x194   : > { %v1233_v40 = vpop.permute.xlu1 %1232  ;;  %v1231_v41 = vpop.permute.xlu0 %1230 }
 0x195   : > { %2286 = vmatmul.mubr.msk.f32.vlgmr.msra.gmra.mxu0 %vm702_vm1, %v1231_v41 }
 0x196   : > { %2288 = vmatprep.mubr.msk.f32.mxu0 %vm702_vm1, %v1233_v40 }
 0x198   : > { %v1235_v42 = vpop.permute.xlu1 %1234  ;;  %v1237_v43 = vpop.permute.xlu0 %1236 }
 0x199   : > { %2289 = vmatmul.mubr.msk.f32.gmra.mxu0 %vm702_vm1, %v1235_v42 }
 0x19a   : > { %2291 = vmatprep.mubr.msk.f32.mxu0 %vm702_vm1, %v1237_v43 }
 0x19c   : > { %v1239_v44 = vpop.permute.xlu1 %1238  ;;  %v1241_v45 = vpop.permute.xlu0 %1240 }
 0x19d   : > { %2292 = vmatmul.mubr.msk.f32.gmra.mxu0 %vm702_vm1, %v1239_v44 }
 0x19e   : > { %2294 = vmatprep.mubr.msk.f32.mxu0 %vm702_vm1, %v1241_v45 }
 0x1a0   : > { %v1243_v46 = vpop.permute.xlu1 %1242 }
 0x1a1   : > { %v1245_v47 = vpop.permute.xlu0 %1244  ;;  %2295 = vmatmul.mubr.msk.f32.gmra.mxu0 %vm702_vm1, %v1243_v46 }
 0x1a2   : > { %2297 = vmatprep.mubr.msk.f32.mxu0 %vm702_vm1, %v1245_v47 }
 0x1a4   : > { %v1247_v48 = vpop.permute.xlu1 %1246 }
 0x1a5   : > { %v1249_v50 = vpop.permute.xlu0 %1248  ;;  %2298 = vmatmul.mubr.msk.f32.gmra.mxu0 %vm702_vm1, %v1247_v48 }
 0x1a6   : > { %2300 = vmatprep.mubr.msk.f32.mxu0 %vm702_vm1, %v1249_v50 }
 0x1a8   : > { %v1251_v52 = vpop.permute.xlu1 %1250 }
 0x1a9   : > { %v1253_v53 = vpop.permute.xlu0 %1252  ;;  %2301 = vmatmul.mubr.msk.f32.gmra.mxu0 %vm702_vm1, %v1251_v52 }
 0x1aa   : > { %2303 = vmatprep.mubr.msk.f32.mxu0 %vm702_vm1, %v1253_v53 }
 0x1ac   : > { %v1255_v55 = vpop.permute.xlu1 %1254 }
 0x1ad   : > { %v1257_v56 = vpop.permute.xlu0 %1256  ;;  %2304 = vmatmul.mubr.msk.f32.gmra.mxu0 %vm702_vm1, %v1255_v55 }
 0x1ae   : > { %2306 = vmatprep.mubr.msk.f32.mxu0 %vm702_vm1, %v1257_v56 }
 0x1b0   : > { %v1259_v58 = vpop.permute.xlu1 %1258 }
 0x1b1   : > { %2307 = vmatmul.mubr.msk.f32.gmra.mxu0 %vm702_vm1, %v1259_v58 }
 0x1df   : > { %v2215_v61 = vpop.f32.mrf.mxu1 }
 0x1e0   : > { %v2953_v62 = vadd.f32 %v2215_v61, %v2950_v59 }
 0x1e1   : > { %v817_v49 = vpop.f32.mrf.mxu1 }
 0x1e2   : > { %v1934_v0 = vmul.f32 -1.442695, %v2953_v62  ;;  %v2957_v1 = vadd.f32 %v2950_v59, %v817_v49 }
 0x1e4   : > { %2432 = vpow2.f32 %v1934_v0  ;;  %v1933_v3 = vmul.f32 -1.442695, %v2957_v1  ;;  %v2218_v4 = vpop.f32.mrf.mxu1 }
 0x1e5   : > { %v2961_v6 = vadd.f32 %v2218_v4, %v2950_v59 }
 0x1e6   : > { %2434 = vpow2.f32 %v1933_v3  ;;  %v827_v7 = vpop.f32.mrf.mxu1 }
 0x1e7   : > { %v1936_v54 = vmul.f32 -1.442695, %v2961_v6  ;;  %v2965_v9 = vadd.f32 %v2950_v59, %v827_v7 }
 0x1e8   : > { %v2221_v10 = vpop.f32.mrf.mxu1 }
 0x1e9   : > { %2436 = vpow2.f32 %v1936_v54  ;;  %v1935_v51 = vmul.f32 -1.442695, %v2965_v9  ;;  %v2969_v12 = vadd.f32 %v2221_v10, %v2950_v59 }
 0x1ea   : > { %v837_v13 = vpop.f32.mrf.mxu1 }
 0x1eb   : > { %2438 = vpow2.f32 %v1935_v51  ;;  %v1938_v14 = vmul.f32 -1.442695, %v2969_v12  ;;  %v2973_v15 = vadd.f32 %v2950_v59, %v837_v13 }
 0x1ec   : > { %v2224_v60 = vpop.f32.mrf.mxu1 }
 0x1ed   : > { %2440 = vpow2.f32 %v1938_v14  ;;  %v1937_v17 = vmul.f32 -1.442695, %v2973_v15  ;;  %v2977_v18 = vadd.f32 %v2224_v60, %v2950_v59 }
 0x1ee   : > { %v847_v57 = vpop.f32.mrf.mxu1 }
 0x1ef   : > { %2442 = vpow2.f32 %v1937_v17  ;;  %v1940_v19 = vmul.f32 -1.442695, %v2977_v18  ;;  %v2981_v20 = vadd.f32 %v2950_v59, %v847_v57 }
 0x1f0   : > { %v2227_v22 = vpop.f32.mrf.mxu1 }
 0x1f1   : > { %v2433_v2 = vpop.eup %2432  ;;  %2444 = vpow2.f32 %v1940_v19  ;;  %v1939_v23 = vmul.f32 -1.442695, %v2981_v20  ;;  %v2985_v24 = vadd.f32 %v2227_v22, %v2950_v59 }
 0x1f2   : > { %v945_v63 = vadd.f32 1.0, %v2433_v2  ;;  %v857_v25 = vpop.f32.mrf.mxu1  ;;  %v2601_v2 = vmov 0  }
 0x1f3   : > { %v2435_v27 = vpop.eup %2434  ;;  %2446 = vpow2.f32 %v1939_v23  ;;  %v1942_v8 = vmul.f32 -1.442695, %v2985_v24  ;;  %v2989_v28 = vadd.f32 %v2950_v59, %v857_v25  ;;  %2366 = vset.pattern.permute.xlu0 %v2601_v2  ;;  %2367 = vset.pattern.permute.xlu1 %v2601_v2 }
 0x1f4   : > { %2448 = vrcp.f32 %v945_v63  ;;  %v944_v5 = vadd.f32 1.0, %v2435_v27  ;;  %v2230_v29 = vpop.f32.mrf.mxu1 }
 0x1f5   : > { %2450 = vpow2.f32 %v1942_v8  ;;  %v1941_v30 = vmul.f32 -1.442695, %v2989_v28  ;;  %v2993_v32 = vadd.f32 %v2230_v29, %v2950_v59 }
 0x1f6   : > { %v2437_v11 = vpop.eup %2436  ;;  %2452 = vrcp.f32 %v944_v5  ;;  %v867_v16 = vpop.f32.mrf.mxu1 }
 0x1f7   : > { %v947_v33 = vadd.f32 1.0, %v2437_v11  ;;  %2454 = vpow2.f32 %v1941_v30  ;;  %v1944_v34 = vmul.f32 -1.442695, %v2993_v32  ;;  %v2997_v21 = vadd.f32 %v2950_v59, %v867_v16 }
 0x1f8   : > { %v2439_v26 = vpop.eup %2438  ;;  %v2233_v35 = vpop.f32.mrf.mxu1 }
 0x1f9   : > { %2456 = vrcp.f32 %v947_v33  ;;  %v946_v31 = vadd.f32 1.0, %v2439_v26  ;;  %v1943_v36 = vmul.f32 -1.442695, %v2997_v21  ;;  %v3001_v37 = vadd.f32 %v2233_v35, %v2950_v59 }
 0x1fa   : > { %v2441_v38 = vpop.eup %2440  ;;  %2458 = vpow2.f32 %v1944_v34  ;;  %v877_v39 = vpop.f32.mrf.mxu1 }
 0x1fb   : > { %2460 = vrcp.f32 %v946_v31  ;;  %v949_v40 = vadd.f32 1.0, %v2441_v38  ;;  %v1946_v41 = vmul.f32 -1.442695, %v3001_v37  ;;  %v3005_v42 = vadd.f32 %v2950_v59, %v877_v39 }
 0x1fc   : > { %v2443_v43 = vpop.eup %2442  ;;  %2462 = vpow2.f32 %v1943_v36  ;;  %v2236_v44 = vpop.f32.mrf.mxu1 }
 0x1fd   : > { %2464 = vrcp.f32 %v949_v40  ;;  %v948_v45 = vadd.f32 1.0, %v2443_v43  ;;  %v1945_v46 = vmul.f32 -1.442695, %v3005_v42  ;;  %v3009_v47 = vadd.f32 %v2236_v44, %v2950_v59 }
 0x1fe   : > { %v2445_v48 = vpop.eup %2444  ;;  %2466 = vpow2.f32 %v1946_v41  ;;  %v887_v50 = vpop.f32.mrf.mxu1 }
 0x1ff   : > { %2468 = vrcp.f32 %v948_v45  ;;  %v951_v52 = vadd.f32 1.0, %v2445_v48  ;;  %v1948_v53 = vmul.f32 -1.442695, %v3009_v47  ;;  %v3013_v55 = vadd.f32 %v2950_v59, %v887_v50 }
 0x200   : > { %v2447_v56 = vpop.eup %2446  ;;  %2470 = vpow2.f32 %v1945_v46 }
 0x201   : > { %v2449_v58 = vpop.eup %2448  ;;  %2472 = vrcp.f32 %v951_v52  ;;  %v950_v61 = vadd.f32 1.0, %v2447_v56  ;;  %v1947_v49 = vmul.f32 -1.442695, %v3013_v55 }
 0x202   : > { %v2451_v0 = vpop.eup %2450  ;;  %2474 = vpow2.f32 %v1948_v53  ;;  %v993_v59 = vmul.f32 %v2449_v58, %v2953_v62 }
 0x203   : > { %v2453_v3 = vpop.eup %2452  ;;  %2476 = vrcp.f32 %v950_v61  ;;  %v953_v4 = vadd.f32 1.0, %v2451_v0  ;;  %v1966_v61 = vld [vmem:[#allocation4] ss:$0 sm:$0xff] }
 0x204   : > { %v2455_v7 = vpop.eup %2454  ;;  %v992_v54 = vmul.f32 %v2453_v3, %v2957_v1  ;;  %2478 = vpow2.f32 %v1947_v49 }
 0x205   : > { %v952_v10 = vadd.f32 1.0, %v2455_v7  ;;  %2480 = vrcp.f32 %v953_v4 }
 0x206   : > { %v2457_v51 = vpop.eup %2456  ;;  %2245 = vmatprep.mubr.msk.f32.mxu1 %vm1019_vm2, %v992_v54 }
 0x207   : > { %v2459_v13 = vpop.eup %2458  ;;  %2482 = vrcp.f32 %v952_v10  ;;  %2246 = vmatmul.mubr.msk.f32.vlgmr.msra.gmra.mxu1 %vm1019_vm2, %v993_v59  ;;  %v995_v1 = vmul.f32 %v2457_v51, %v2961_v6 }
 0x208   : > { %v2461_v14 = vpop.eup %2460  ;;  %v955_v60 = vadd.f32 1.0, %v2459_v13 }
 0x209   : > { %v2463_v17 = vpop.eup %2462  ;;  %v994_v57 = vmul.f32 %v2461_v14, %v2965_v9 }
 0x20a   : > { %v2465_v19 = vpop.eup %2464  ;;  %v954_v22 = vadd.f32 1.0, %v2463_v17  ;;  %2484 = vrcp.f32 %v955_v60 }
 0x20b   : > { %v2467_v62 = vpop.eup %2466  ;;  %2248 = vmatprep.mubr.msk.f32.mxu1 %vm1019_vm2, %v994_v57  ;;  %v997_v8 = vmul.f32 %v2465_v19, %v2969_v12 }
 0x20c   : > { %v2469_v23 = vpop.eup %2468  ;;  %2486 = vrcp.f32 %v954_v22  ;;  %v957_v63 = vadd.f32 1.0, %v2467_v62  ;;  %2249 = vmatmul.mubr.msk.f32.gmra.mxu1 %vm1019_vm2, %v995_v1 }
 0x20d   : > { %v2471_v25 = vpop.eup %2470  ;;  %v996_v27 = vmul.f32 %v2469_v23, %v2973_v15 }
 0x20e   : > { %v2473_v9 = vpop.eup %2472  ;;  %v956_v6 = vadd.f32 1.0, %v2471_v25  ;;  %2488 = vrcp.f32 %v957_v63 }
 0x20f   : > { %v2475_v5 = vpop.eup %2474  ;;  %2251 = vmatprep.mubr.msk.f32.mxu1 %vm1019_vm2, %v996_v27  ;;  %v999_v33 = vmul.f32 %v2473_v9, %v2977_v18 }
 0x210   : > { %v2477_v29 = vpop.eup %2476  ;;  %2490 = vrcp.f32 %v956_v6  ;;  %v959_v30 = vadd.f32 1.0, %v2475_v5  ;;  %2252 = vmatmul.mubr.msk.f32.gmra.mxu1 %vm1019_vm2, %v997_v8 }
 0x211   : > { %v2479_v11 = vpop.eup %2478  ;;  %v998_v16 = vmul.f32 %v2477_v29, %v2981_v20 }
 0x212   : > { %v958_v34 = vadd.f32 1.0, %v2479_v11  ;;  %v2481_v15 = vpop.eup %2480  ;;  %2492 = vrcp.f32 %v959_v30 }
 0x213   : > { %2254 = vmatprep.mubr.msk.f32.mxu1 %vm1019_vm2, %v998_v16  ;;  %v1001_v35 = vmul.f32 %v2481_v15, %v2985_v24 }
 0x214   : > { %v2483_v12 = vpop.eup %2482  ;;  %2494 = vrcp.f32 %v958_v34  ;;  %2255 = vmatmul.mubr.msk.f32.gmra.mxu1 %vm1019_vm2, %v999_v33 }
 0x215   : > { %v1000_v26 = vmul.f32 %v2483_v12, %v2989_v28 }
 0x217   : > { %2257 = vmatprep.mubr.msk.f32.mxu1 %vm1019_vm2, %v1000_v26  ;;  %v2485_v31 = vpop.eup %2484 }
 0x218   : > { %2258 = vmatmul.mubr.msk.f32.gmra.mxu1 %vm1019_vm2, %v1001_v35  ;;  %v1003_v36 = vmul.f32 %v2485_v31, %v2993_v32 }
 0x219   : > { %v2487_v20 = vpop.eup %2486 }
 0x21a   : > { %v1002_v18 = vmul.f32 %v2487_v20, %v2997_v21 }
 0x21b   : > { %v2489_v38 = vpop.eup %2488 }
 0x21c   : > { %2260 = vmatprep.mubr.msk.f32.mxu1 %vm1019_vm2, %v1002_v18  ;;  %v1005_v24 = vmul.f32 %v2489_v38, %v3001_v37 }
 0x21d   : > { %v2491_v39 = vpop.eup %2490  ;;  %2261 = vmatmul.mubr.msk.f32.gmra.mxu1 %vm1019_vm2, %v1003_v36 }
 0x21e   : > { %v1004_v28 = vmul.f32 %v2491_v39, %v3005_v42 }
 0x21f   : > { %v2493_v40 = vpop.eup %2492 }
 0x220   : > { %2263 = vmatprep.mubr.msk.f32.mxu1 %vm1019_vm2, %v1004_v28  ;;  %v1007_v32 = vmul.f32 %v2493_v40, %v3009_v47 }
 0x221   : > { %v2495_v41 = vpop.eup %2494  ;;  %2264 = vmatmul.mubr.msk.f32.gmra.mxu1 %vm1019_vm2, %v1005_v24 }
 0x222   : > { %v1006_v21 = vmul.f32 %v2495_v41, %v3013_v55 }
 0x224   : > { %2266 = vmatprep.mubr.msk.f32.mxu1 %vm1019_vm2, %v1006_v21 }
 0x225   : > { %2267 = vmatmul.mubr.msk.f32.gmra.mxu1 %vm1019_vm2, %v1007_v32 }
 0x255   : > { %v3048_v43 = vpop.f32.mrf.mxu0 }
 0x256   : > { %v1364_v20 = vadd.f32 %v3048_v43, %v1966_v61  ;;  %v1630_v43 = vlaneseq }
 0x257   : > { %v1358_v44 = vpop.f32.mrf.mxu0 }
 0x258   : > { %v1359_v15 = vadd.f32 %v1966_v61, %v1358_v44  ;;  %v1984_v40 = vmul.f32 -1.442695, %v1364_v20 }
 0x259   : > { %v2290_v42 = vpop.f32.mrf.mxu0 }
 0x25a   : > { %v1374_v30 = vadd.f32 %v2290_v42, %v1966_v61  ;;  %v1983_v39 = vmul.f32 -1.442695, %v1359_v15 }
 0x25b   : > { %v1368_v45 = vpop.f32.mrf.mxu0 }
 0x25c   : > { %v1369_v8 = vadd.f32 %v1966_v61, %v1368_v45  ;;  %v1986_v18 = vmul.f32 -1.442695, %v1374_v30 }
 0x25d   : > { %v2293_v37 = vpop.f32.mrf.mxu0 }
 0x25e   : > { %v1384_v27 = vadd.f32 %v2293_v37, %v1966_v61  ;;  %v1985_v12 = vmul.f32 -1.442695, %v1369_v8 }
 0x25f   : > { %v1378_v46 = vpop.f32.mrf.mxu0 }
 0x260   : > { %v1379_v63 = vadd.f32 %v1966_v61, %v1378_v46  ;;  %v1988_v11 = vmul.f32 -1.442695, %v1384_v27 }
 0x261   : > { %v2296_v48 = vpop.f32.mrf.mxu0 }
 0x262   : > { %v1394_v62 = vadd.f32 %v2296_v48, %v1966_v61  ;;  %v1987_v6 = vmul.f32 -1.442695, %v1379_v63  ;;  %v2602_v48 = vmov 0.0  }
 0x263   : > { %v1388_v50 = vpop.f32.mrf.mxu0  ;;  %2309 = vmatprep.subr.mxu1 %v2602_v48  ;;  %2341 = vmatprep.mubr.msk.f32.mxu1 %vm2603_vm3, %v2602_v48 }
 0x264   : > { %v1389_v22 = vadd.f32 %v1966_v61, %v1388_v50  ;;  %v1990_v9 = vmul.f32 -1.442695, %v1394_v62  ;;  %v3053_v50 = vshrl.u32 %v1630_v43, 7 }
 0x265   : > { %v2299_v52 = vpop.f32.mrf.mxu0 }
 0x266   : > { %v1404_v19 = vadd.f32 %v2299_v52, %v1966_v61  ;;  %v1989_v25 = vmul.f32 -1.442695, %v1389_v22  ;;  %v1651_v30 = vadd.s32 48, %v3053_v50 }
 0x267   : > { %v1398_v53 = vpop.f32.mrf.mxu0 }
 0x268   : > { %v1399_v17 = vadd.f32 %v1966_v61, %v1398_v53  ;;  %v1992_v23 = vmul.f32 -1.442695, %v1404_v19 }
 0x269   : > { %v2302_v56 = vpop.f32.mrf.mxu0 }
 0x26a   : > { %v1414_v14 = vadd.f32 %v2302_v56, %v1966_v61  ;;  %v1991_v2 = vmul.f32 -1.442695, %v1399_v17  ;;  %v1655_v17 = vadd.s32 80, %v3053_v50 }
 0x26b   : > { %v1408_v58 = vpop.f32.mrf.mxu0 }
 0x26c   : > { %v1409_v54 = vadd.f32 %v1966_v61, %v1408_v58  ;;  %v1994_v1 = vmul.f32 -1.442695, %v1414_v14  ;;  %v1658_v58 = vadd.s32 104, %v3053_v50 }
 0x26d   : > { %v2305_v55 = vpop.f32.mrf.mxu0 }
 0x26e   : > { %v1424_v49 = vadd.f32 %v2305_v55, %v1966_v61  ;;  %v1993_v57 = vmul.f32 -1.442695, %v1409_v54 }
 0x26f   : > { %v1418_v47 = vpop.f32.mrf.mxu0 }
 0x270   : > { %v1419_v0 = vadd.f32 %v1966_v61, %v1418_v47  ;;  %v1996_v10 = vmul.f32 -1.442695, %v1424_v49 }
 0x271   : > { %v2308_v3 = vpop.f32.mrf.mxu0 }
 0x272   : > { %v1995_v4 = vmul.f32 -1.442695, %v1419_v0  ;;  %v1434_v7 = vadd.f32 %v2308_v3, %v1966_v61  ;;  %v1657_v3 = vadd.s32 96, %v3053_v50 }
 0x273   : > { %v1428_v59 = vpop.f32.mrf.mxu0 }
 0x274   : > { %v1998_v51 = vmul.f32 -1.442695, %v1434_v7  ;;  %v1429_v13 = vadd.f32 %v1966_v61, %v1428_v59  ;;  %2496 = vpow2.f32 %v1995_v4  ;;  %v3057_v61 = vstv %s2000_s9 }
 0x275   : > { %v3060_v0 = vadd.s32 %v1658_v58, %v3057_v61  ;;  %v3064_v59 = vadd.s32 %v1657_v3, %v3057_v61  ;;  %v3072_v22 = vadd.s32 %v1655_v17, %v3057_v61  ;;  %v1659_v17 = vadd.s32 112, %v3053_v50 }
 0x276   : > { %v1997_v60 = vmul.f32 -1.442695, %v1429_v13  ;;  %2498 = vpow2.f32 %v1998_v51 }
 0x277   : > { %2500 = vpow2.f32 %v1996_v10  ;;  %v1656_v10 = vadd.s32 88, %v3053_v50  ;;  %vm1690_vm9 = vcmp.lt.s32.totalorder %v3060_v0, 300  ;;  %vm1689_vm10 = vcmp.lt.s32.totalorder %v3064_v59, 300 }
 0x278   : > { %2502 = vpow2.f32 %v1997_v60  ;;  %vm1687_vm12 = vcmp.lt.s32.totalorder %v3072_v22, 300 }
 0x279   : > { %2504 = vpow2.f32 %v1993_v57  ;;  %v3068_v60 = vadd.s32 %v1656_v10, %v3057_v61 }
 0x27a   : > { %2506 = vpow2.f32 %v1994_v1 }
 0x27b   : > { %2508 = vpow2.f32 %v1991_v2  ;;  %v1654_v2 = vadd.s32 72, %v3053_v50  ;;  %vm1688_vm11 = vcmp.lt.s32.totalorder %v3068_v60, 300 }
 0x27c   : > { %2510 = vpow2.f32 %v1992_v23 }
 0x27d   : > { %2512 = vpow2.f32 %v1989_v25  ;;  %v3076_v63 = vadd.s32 %v1654_v2, %v3057_v61  ;;  %v1653_v25 = vadd.s32 64, %v3053_v50  ;;  %v1675_v2 = vadd.s32 %v1659_v17, %v3057_v61 }
 0x27e   : > { %2514 = vpow2.f32 %v1990_v9 }
 0x27f   : > { %2516 = vpow2.f32 %v1987_v6  ;;  %v3080_v8 = vadd.s32 %v1653_v25, %v3057_v61  ;;  %v1652_v6 = vadd.s32 56, %v3053_v50  ;;  %vm1691_vm8 = vcmp.lt.s32.totalorder %v1675_v2, 300 }
 0x280   : > { %vm1686_vm13 = vcmp.lt.s32.totalorder %v3076_v63, 300 }
 0x281   : > { %v2497_v5 = vpop.eup %2496  ;;  %vm1685_vm14 = vcmp.lt.s32.totalorder %v3080_v8, 300 }
 0x282   : > { %v1497_v26 = vadd.f32 1.0, %v2497_v5 }
 0x283   : > { %v2499_v29 = vpop.eup %2498 }
 0x284   : > { %v2501_v16 = vpop.eup %2500  ;;  %v1500_v33 = vadd.f32 1.0, %v2499_v29  ;;  %v3084_v29 = vadd.s32 %v1652_v6, %v3057_v61 }
 0x285   : > { %v2503_v34 = vpop.eup %2502  ;;  %v1498_v36 = vadd.f32 1.0, %v2501_v16  ;;  %v3088_v16 = vadd.s32 %v1651_v30, %v3057_v61 }
 0x286   : > { %2518 = vrcp.f32 %v1500_v33  ;;  %v1499_v35 = vadd.f32 1.0, %v2503_v34  ;;  %v2505_v31 = vpop.eup %2504  ;;  %v1650_v33 = vadd.s32 40, %v3053_v50  ;;  %vm1684_vm15 = vcmp.lt.s32.totalorder %v3084_v29, 300 }
 0x287   : > { %2520 = vpow2.f32 %v1988_v11  ;;  %v2507_v38 = vpop.eup %2506  ;;  %v1495_v28 = vadd.f32 1.0, %v2505_v31  ;;  %v1648_v31 = vadd.s32 24, %v3053_v50  ;;  %vm1683_vm0 = vcmp.lt.s32.totalorder %v3088_v16, 300 }
 0x288   : > { %2522 = vrcp.f32 %v1499_v35  ;;  %v2509_v24 = vpop.eup %2508  ;;  %v1496_v41 = vadd.f32 1.0, %v2507_v38  ;;  %v3092_v15 = vadd.s32 %v1650_v33, %v3057_v61 }
 0x289   : > { %2524 = vpow2.f32 %v1985_v12  ;;  %v2511_v21 = vpop.eup %2510  ;;  %v1493_v32 = vadd.f32 1.0, %v2509_v24  ;;  %v1649_v12 = vadd.s32 32, %v3053_v50 }
 0x28a   : > { %2526 = vrcp.f32 %v1497_v26  ;;  %v2513_v44 = vpop.eup %2512  ;;  %v1494_v42 = vadd.f32 1.0, %v2511_v21  ;;  %v3112_v21 = vadd.s32 %v3057_v61, %v3053_v50  ;;  %vm1682_vm1 = vcmp.lt.s32.totalorder %v3092_v15, 300 }
 0x28b   : > { %2528 = vpow2.f32 %v1986_v18  ;;  %v2515_v45 = vpop.eup %2514  ;;  %v1491_v46 = vadd.f32 1.0, %v2513_v44  ;;  %v3096_v35 = vadd.s32 %v1649_v12, %v3057_v61  ;;  %v3100_v18 = vadd.s32 %v1648_v31, %v3057_v61 }
 0x28c   : > { %2530 = vrcp.f32 %v1498_v36  ;;  %v2517_v37 = vpop.eup %2516  ;;  %v1492_v56 = vadd.f32 1.0, %v2515_v45  ;;  %v1647_v36 = vadd.s32 16, %v3053_v50  ;;  %v1639_v44 = vand.u32 127, %v1630_v43  ;;  %v1999_v45 = vld [vmem:[%s383_s20] ss:$0 sm:$0xff] }
 0x28d   : > { %2532 = vpow2.f32 %v1983_v39  ;;  %v1489_v49 = vadd.f32 1.0, %v2517_v37  ;;  %vm1636_vm4 = vcmp.eq.s32.totalorder %v3053_v50, %v1999_v45  ;;  %vm1681_vm2 = vcmp.lt.s32.totalorder %v3096_v35, 300 }
 0x28e   : > { %2534 = vrcp.f32 %v1495_v28  ;;  %v3104_v39 = vadd.s32 %v1647_v36, %v3057_v61  ;;  %v1646_v28 = vadd.s32 8, %v3053_v50  ;;  %vm1680_vm3 = vcmp.lt.s32.totalorder %v3100_v18, 300 }
 0x28f   : > { %2536 = vpow2.f32 %v1984_v40 }
 0x290   : > { %2538 = vrcp.f32 %v1496_v41  ;;  %v3108_v40 = vadd.s32 %v1646_v28, %v3057_v61 }
 0x291   : > { %2540 = vrcp.f32 %v1493_v32 }
 0x292   : > { %2542 = vrcp.f32 %v1494_v42  ;;  %v1641_v42 = vadd.s32 %v3057_v61, %v1639_v44 }
 0x293   : > { %v2519_v52 = vpop.eup %2518  ;;  %2544 = vrcp.f32 %v1491_v46 }
 0x294   : > { %v2521_v53 = vpop.eup %2520  ;;  %1610 = vperm.xlu0 %2366, %v2519_v52   ;;  %2546 = vrcp.f32 %v1492_v56  ;;  %vm1642_vm5 = vcmp.lt.s32.totalorder %v1641_v42, 300 }
 0x295   : > { %v2523_v55 = vpop.eup %2522  ;;  %v1490_v54 = vadd.f32 1.0, %v2521_v53  ;;  %2548 = vrcp.f32 %v1489_v49  ;;  %vm3125_vm6 = vmand %vm1636_vm4, %vm1642_vm5  ;;  %vm1679_vm4 = vcmp.lt.s32.totalorder %v3104_v39, 300  ;;  %vm1678_vm5 = vcmp.lt.s32.totalorder %v3108_v40, 300 }
 0x296   : > { %v2525_v47 = vpop.eup %2524  ;;  %1605 = vperm.xlu1 %2367, %v2523_v55   ;;  %v2001_v43 = vsel %vm3125_vm6, 1.0, %v2602_v48 }
 0x297   : > { %v2527_v4 = vpop.eup %2526  ;;  %v1487_v14 = vadd.f32 1.0, %v2525_v47  ;;  %2550 = vrcp.f32 %v1490_v54 }
 0x298   : > { %v2529_v7 = vpop.eup %2528  ;;  %1595 = vperm.xlu0 %2366, %v2527_v4  }
 0x299   : > { %v2531_v51 = vpop.eup %2530  ;;  %v1488_v1 = vadd.f32 1.0, %v2529_v7  ;;  %2552 = vrcp.f32 %v1487_v14 }
 0x29a   : > { %v2533_v13 = vpop.eup %2532  ;;  %1600 = vperm.xlu1 %2367, %v2531_v51  }
 0x29b   : > { %v2535_v57 = vpop.eup %2534  ;;  %v1485_v23 = vadd.f32 1.0, %v2533_v13  ;;  %2554 = vrcp.f32 %v1488_v1  ;;  %v1660_v13 = vadd.s32 120, %v3053_v50 }
 0x29c   : > { %v2537_v19 = vpop.eup %2536  ;;  %1585 = vperm.xlu0 %2366, %v2535_v57  }
 0x29d   : > { %v2539_v62 = vpop.eup %2538  ;;  %v1486_v9 = vadd.f32 1.0, %v2537_v19  ;;  %2556 = vrcp.f32 %v1485_v23  ;;  %v1676_v57 = vadd.s32 %v1660_v13, %v3057_v61  ;;  %v3150_v19 = vld [vmem:[%s3230_s7] ss:$0 sm:$0xff] }
 0x29e   : > { %1590 = vperm.xlu1 %2367, %v2539_v62   ;;  %v2541_v27 = vpop.eup %2540 }
 0x29f   : > { %v2543_v5 = vpop.eup %2542  ;;  %2558 = vrcp.f32 %v1486_v9  ;;  %vm1692_vm7 = vcmp.lt.s32.totalorder %v1676_v57, 300 }
 0x2a0   : > { %1575 = vperm.xlu0 %2366, %v2541_v27   ;;  %v2545_v11 = vpop.eup %2544 }
 0x2a1   : > { %v2547_v34 = vpop.eup %2546 }
 0x2a2   : > { %1580 = vperm.xlu1 %2367, %v2543_v5   ;;  %v2549_v26 = vpop.eup %2548 }
 0x2a4   : > { %1565 = vperm.xlu0 %2366, %v2545_v11   ;;  %v2551_v20 = vpop.eup %2550 }
 0x2a6   : > { %1570 = vperm.xlu1 %2367, %v2547_v34   ;;  %v2553_v38 = vpop.eup %2552 }
 0x2a8   : > { %1555 = vperm.xlu0 %2366, %v2549_v26   ;;  %v2555_v24 = vpop.eup %2554 }
 0x2aa   : > { %1560 = vperm.xlu1 %2367, %v2551_v20   ;;  %v2557_v41 = vpop.eup %2556 }
 0x2ac   : > { %1545 = vperm.xlu0 %2366, %v2553_v38   ;;  %v2559_v32 = vpop.eup %2558 }
 0x2ae   : > { %1550 = vperm.xlu1 %2367, %v2555_v24  }
 0x2b0   : > { %1535 = vperm.xlu0 %2366, %v2557_v41  }
 0x2b2   : > { %1540 = vperm.xlu1 %2367, %v2559_v32  }
 0x2c7   : > { %v3123_v37 = vpop.f32.mrf.mxu1 }
 0x2c8   : > { %v1140_v35 = vadd.f32 %v3123_v37, %v3150_v19  ;;  %v2604_v37 = vmov 1.0  }
 0x2c9   : > { %v3132_v52 = vpop.f32.mrf.mxu1 }
 0x2ca   : > { %v1135_v18 = vadd.f32 %v3150_v19, %v3132_v52  ;;  %v1743_v52 = vld [vmem:[#allocation2] sm:$0xff] }
 0x2cc   : > { %v3134_v53 = vpop.f32.mrf.mxu1 }
 0x2cd   : > { %v1150_v16 = vadd.f32 %v3134_v53, %v3150_v19 }
 0x2ce   : > { %v3136_v56 = vpop.f32.mrf.mxu1 }
 0x2cf   : > { %v1145_v15 = vadd.f32 %v3150_v19, %v3136_v56 }
 0x2d0   : > { %v3138_v58 = vpop.f32.mrf.mxu1 }
 0x2d1   : > { %v1160_v8 = vadd.f32 %v3138_v58, %v3150_v19 }
 0x2d2   : > { %v3140_v55 = vpop.f32.mrf.mxu1 }
 0x2d3   : > { %v1155_v29 = vadd.f32 %v3150_v19, %v3140_v55 }
 0x2d4   : > { %v2256_v47 = vpop.f32.mrf.mxu1 }
 0x2d5   : > { %v1170_v22 = vadd.f32 %v2256_v47, %v3150_v19 }
 0x2d6   : > { %1817 = vadd.xlane.f32.xlu1 %v2001_v43  ;;  %v3142_v49 = vpop.f32.mrf.mxu1 }
 0x2d7   : > { %v1165_v63 = vadd.f32 %v3150_v19, %v3142_v49 }
 0x2d8   : > { %v2259_v3 = vpop.f32.mrf.mxu1 }
 0x2d9   : > { %v1180_v59 = vadd.f32 %v2259_v3, %v3150_v19 }
 0x2da   : > { %v1174_v4 = vpop.f32.mrf.mxu1 }
 0x2db   : > { %v1175_v60 = vadd.f32 %v3150_v19, %v1174_v4 }
 0x2dd   : > { %v2262_v7 = vpop.f32.mrf.mxu1 }
 0x2de   : > { %v1190_v34 = vadd.f32 %v2262_v7, %v3150_v19 }
 0x2df   : > { %v1184_v54 = vpop.f32.mrf.mxu1 }
 0x2e0   : > { %v1185_v31 = vadd.f32 %v3150_v19, %v1184_v54  ;;  %v1816_v54 = vld [vmem:[#allocation3] sm:$0xff] }
 0x2e1   : > { %v2265_v10 = vpop.f32.mrf.mxu1 }
 0x2e2   : > { %v1200_v5 = vadd.f32 %v2265_v10, %v3150_v19 }
 0x2e3   : > { %v1194_v51 = vpop.f32.mrf.mxu1 }
 0x2e4   : > { %v1195_v61 = vadd.f32 %v3150_v19, %v1194_v51 }
 0x2e5   : > { %v2268_v14 = vpop.f32.mrf.mxu1 }
 0x2e6   : > { %v1210_v62 = vadd.f32 %v2268_v14, %v3150_v19 }
 0x2e7   : > { %v1204_v1 = vpop.f32.mrf.mxu1 }
 0x2e8   : > { %v1205_v25 = vadd.f32 %v3150_v19, %v1204_v1 }
 0x30f   : > { %v1611_v23 = vpop.permute.xlu0 %1610 }
 0x310   : > { %v1628_v27 = vmul.f32 %v1611_v23, %v1210_v62 }
 0x311   : > { %v1606_v9 = vpop.permute.xlu1 %1605 }
 0x312   : > { %v1627_v50 = vmul.f32 %v1606_v9, %v1205_v25  ;;  %2310 = vmatpush3.msk.msra.mxu1 %vm1692_vm7, %v1628_v27  ;;  %vm1677_vm7 = vcmp.lt.s32.totalorder %v3112_v21, 300 }
 0x313   : > { %v1596_v6 = vpop.permute.xlu0 %1595  ;;  %2311 = vmatprep.subr.mxu1 %v2602_v48 }
 0x314   : > { %2312 = vmatpush3.msk.msra.mxu1 %vm1691_vm8, %v1627_v50  ;;  %v1625_v12 = vmul.f32 %v1596_v6, %v1195_v61  ;;  %vm1820_vm8 = vcmask 7168  }
 0x315   : > { %v1601_v30 = vpop.permute.xlu1 %1600  ;;  %2313 = vmatprep.subr.mxu1 %v2602_v48 }
 0x316   : > { %v1626_v11 = vmul.f32 %v1601_v30, %v1200_v5 }
 0x317   : > { %v1586_v33 = vpop.permute.xlu0 %1585 }
 0x318   : > { %2314 = vmatpush3.msk.msra.mxu1 %vm1690_vm9, %v1626_v11  ;;  %v1623_v36 = vmul.f32 %v1586_v33, %v1185_v31 }
 0x319   : > { %v1591_v26 = vpop.permute.xlu1 %1590  ;;  %2315 = vmatprep.subr.mxu1 %v2602_v48 }
 0x31a   : > { %v1624_v20 = vmul.f32 %v1591_v26, %v1190_v34  ;;  %2316 = vmatpush3.msk.msra.mxu1 %vm1689_vm10, %v1625_v12 }
 0x31b   : > { %v1576_v0 = vpop.permute.xlu0 %1575  ;;  %2317 = vmatprep.subr.mxu1 %v2602_v48 }
 0x31c   : > { %2318 = vmatpush3.msk.msra.mxu1 %vm1688_vm11, %v1624_v20  ;;  %v1621_v41 = vmul.f32 %v1576_v0, %v1175_v60 }
 0x31d   : > { %v1581_v38 = vpop.permute.xlu1 %1580  ;;  %2319 = vmatprep.subr.mxu1 %v2602_v48 }
 0x31e   : > { %v1622_v28 = vmul.f32 %v1581_v38, %v1180_v59  ;;  %2320 = vmatpush3.msk.msra.mxu1 %vm1687_vm12, %v1623_v36 }
 0x31f   : > { %v1566_v24 = vpop.permute.xlu0 %1565  ;;  %2321 = vmatprep.subr.mxu1 %v2602_v48 }
 0x320   : > { %2322 = vmatpush3.msk.msra.mxu1 %vm1686_vm13, %v1622_v28  ;;  %v1619_v45 = vmul.f32 %v1566_v24, %v1165_v63 }
 0x321   : > { %v1571_v32 = vpop.permute.xlu1 %1570  ;;  %2323 = vmatprep.subr.mxu1 %v2602_v48 }
 0x322   : > { %v1620_v44 = vmul.f32 %v1571_v32, %v1170_v22  ;;  %2324 = vmatpush3.msk.msra.mxu1 %vm1685_vm14, %v1621_v41 }
 0x323   : > { %v1556_v42 = vpop.permute.xlu0 %1555  ;;  %2325 = vmatprep.subr.mxu1 %v2602_v48 }
 0x324   : > { %2326 = vmatpush3.msk.msra.mxu1 %vm1684_vm15, %v1620_v44  ;;  %v1617_v58 = vmul.f32 %v1556_v42, %v1155_v29 }
 0x325   : > { %v1561_v43 = vpop.permute.xlu1 %1560  ;;  %2327 = vmatprep.subr.mxu1 %v2602_v48 }
 0x326   : > { %v1618_v47 = vmul.f32 %v1561_v43, %v1160_v8  ;;  %2328 = vmatpush3.msk.msra.mxu1 %vm1683_vm0, %v1619_v45 }
 0x327   : > { %v1546_v49 = vpop.permute.xlu0 %1545  ;;  %2329 = vmatprep.subr.mxu1 %v2602_v48 }
 0x328   : > { %2330 = vmatpush3.msk.msra.mxu1 %vm1682_vm1, %v1618_v47  ;;  %v1615_v53 = vmul.f32 %v1546_v49, %v1145_v15 }
 0x329   : > { %v1551_v3 = vpop.permute.xlu1 %1550  ;;  %2331 = vmatprep.subr.mxu1 %v2602_v48 }
 0x32a   : > { %v1616_v55 = vmul.f32 %v1551_v3, %v1150_v16  ;;  %2332 = vmatpush3.msk.msra.mxu1 %vm1681_vm2, %v1617_v58 }
 0x32b   : > { %2333 = vmatprep.subr.mxu1 %v2602_v48  ;;  %v1536_v4 = vpop.permute.xlu0 %1535 }
 0x32c   : > { %2334 = vmatpush3.msk.msra.mxu1 %vm1680_vm3, %v1616_v55  ;;  %v1613_v39 = vmul.f32 %v1536_v4, %v1135_v18 }
 0x32d   : > { %v1541_v7 = vpop.permute.xlu1 %1540  ;;  %2335 = vmatprep.subr.mxu1 %v2602_v48 }
 0x32e   : > { %v1614_v56 = vmul.f32 %v1541_v7, %v1140_v35  ;;  %2336 = vmatpush3.msk.msra.mxu1 %vm1679_vm4, %v1615_v53 }
 0x32f   : > { %2337 = vmatprep.subr.mxu1 %v2602_v48 }
 0x330   : > { %2338 = vmatpush3.msk.msra.mxu1 %vm1678_vm5, %v1614_v56 }
 0x331   : > { %2339 = vmatprep.subr.mxu1 %v2602_v48 }
 0x332   : > { %2340 = vmatpush3.msk.msra.mxu1 %vm1677_vm7, %v1613_v39 }
 0x333   : > { %2342 = vmatmul.mubr.msk.f32.vlgmr.msra.gmra.mxu1 %vm3125_vm6, %v2604_v37 }
 0x35f   : > { %v1818_v40 = vpop.xlane.xlu1 %1817 }
 0x360   : > { %v1819_v10 = vadd.f32 %v1818_v40, %v1816_v54 }
 0x362   : > { %1821 = vst.msk [vmem:[#allocation3] sm:$0xff] %vm1820_vm8, %v1819_v10 }
 0x3f2   : > { %1825 = sbr.rel (%p2019_p6) target bundleno = 1159 (0x487), region = 68 }
 0x3f3   : > { %v1810_v51 = vpop.f32.mrf.mxu1 }
 0x3f4   : > { %v1814_v13 = vadd.f32 %v1810_v51, %v1743_v52 }
 0x3f5   : > { %v2343_v14 = vpop.f32.mrf.mxu1 }
 0x3f6   : > { %1815 = vst [vmem:[#allocation2] sm:$0xff] %v1814_v13 }
 0x3f7   : > { %v1827_v21 = vld [vmem:[#allocation3] sm:$0xff]  ;;  %v2605_v48 = vmov 0  }
 0x3f8   : > { %2560 = vset.pattern.permute.xlu0 %v2605_v48  ;;  %v1828_v17 = vadd.f32 1.0, %v1827_v21 }
 0x3fa   : > { %1831 = vperm.xlu0 %2560, %v1828_v17  }
 0x3fd   : > { %v1826_v57 = vld [vmem:[#allocation2] sm:$0xff] }
 0x475   : > { %v1832_v46 = vpop.permute.xlu0 %1831 }
 0x476   : > { %2561 = vrcp.f32 %v1832_v46 }
 0x483   : > { %v2562_v19 = vpop.eup %2561 }
 0x484   : > { %v1835_v1 = vmul.f32 %v2562_v19, %v1826_v57 }
 0x486   : > { %1836 = vst [vmem:[#allocation5] sm:$0xff] %v1835_v1 }
 0x487 PF: > { %p2348_p7 = scmp.eq.s32.totalorder %s2671_s16, 2  ;;  %s2606_s21 = smov [#allocation5]  }
 0x488   : > { %s1844_s22 = sshll.u32 %s2606_s21, 4  ;;  %s1845_s22 = int_to_ptr.vmem [resolvable:$true] %s1844_s22 }
 0x489   : > { %s2563_s23 = scalar_lea.vmem %s1845_s22, 128  ;;  %p2570_p11 = scmp.lt.s32.totalorder %s1845_s22, %s1845_s22 }
 0x48a   : > { %p2564_p8 = scmp.ne.s32.totalorder %s1845_s22, %s2563_s23  ;;  %p2571_p12 = scmp.lt.s32.totalorder %s2563_s23, %s2563_s23 }
 0x48c   : > { %p2565_p9 = pnand %p2564_p8, %p2348_p7  ;;  %p2572_p13 = por %p2571_p12, %p2570_p11 }
 0x48e   : > { %p2566_p10 = pneg %p2565_p9 }
 0x490   : > { %p2573_p0 = pnand %p2572_p13, %p2566_p10 }
 0x492   : > { %2576 = shalt.err (!%p2573_p0)
}
 0x493   : > { %2345 = dma.vmem_to_hbm [thread:$0]  (%p2348_p7), %s1845_s22, 128, %s3233_s10, [#allocation6]  }
 0x494   : > { %2592 = dma.done.wait (%p2348_p7), [#allocation6], 128  }
 0x495   : > { %2594 = vsyncadd (%p2348_p7), [#allocation6], 4294967168 }
 0x496 PF: > { %s23_s15 = sadd.s32 1, %s2597_s15  }
 0x497   : > { %p20_p1 = scmp.ge.s32.totalorder %s23_s15, 5  }
 0x499   :  { %22 = sbr.rel (!%p20_p1) target bundleno = 4 (0x4), region = 98 }
 0x49e   :  { %1857 = vsyncpa [#allocation6], 1 }
 0x49f   :  { %1859 = vsyncpa [#allocation6 + $0x1], 1 }

</bundles_post_ra>
